<compile_context>
chip_gen: v7x
topology: tpu7x:2x2x1
jax: 0.10.0
libtpu: 0.0.40
codegen_flags: <defaults>
</compile_context>

<pallas_src>
import jax
import jax.numpy as jnp
from jax.experimental import pallas as pl
from jax.experimental.pallas import tpu as pltpu

EPS = 1e-5


def se_conv_bn_kernel(x_ref, gate_ref, w_ref, gb_ref, o_ref):
    # x_ref:    (Cin, M)        channels on sublanes, flattened N*H*W on lanes
    # gate_ref: (1, Cin)        SE pre-activation (per-sample, N == 1)
    # w_ref:    (Cb, Cin)       this grid block's slice of the 1x1 conv weight
    # gb_ref:   (Cb, 2)         gamma | beta stacked (single small DMA)
    # o_ref:    (Cb, M)
    m = o_ref.shape[1]

    # Fold the SE sigmoid gate into the (small) weight: W @ (x * g) == (W * g^T) @ x.
    w_scaled = w_ref[...] * jax.nn.sigmoid(gate_ref[...].astype(jnp.float32))

    # 1x1 conv == matmul on the MXU: bf16 operands, f32 accumulation.
    # (.astype is a no-op if the inputs already arrive as bf16.)
    y = jnp.dot(
        w_scaled.astype(jnp.bfloat16),
        x_ref[...].astype(jnp.bfloat16),
        preferred_element_type=jnp.float32,
    )                                                        # (Cb, M) f32

    # BatchNorm2d (training-mode batch stats) over N*H*W, one reduction pass.
    inv_m = 1.0 / m
    s = jnp.sum(y, axis=1, keepdims=True)                    # (Cb, 1)
    ss = jnp.sum(y * y, axis=1, keepdims=True)               # (Cb, 1)
    mean = s * inv_m
    var = jnp.maximum(ss * inv_m - mean * mean, 0.0)         # clamp one-pass cancel

    gb = gb_ref[...]                                         # (Cb, 2)
    gamma = gb[:, 0:1]
    beta = gb[:, 1:2]
    scale = jax.lax.rsqrt(var + EPS) * gamma                 # (Cb, 1)
    shift = beta - mean * scale                              # (Cb, 1)
    # Two VALU passes over the y vregs (mul, add) instead of three.
    o_ref[...] = (y * scale + shift).astype(o_ref.dtype)


def _num_cout_blocks(cout):
    """2 blocks on dual-TensorCore v7x, 1 elsewhere (v5e/v6e are single-TC)."""
    try:
        kind = jax.devices()[0].device_kind.lower()
    except Exception:  # pragma: no cover - defensive only
        return 1
    nb = 2 if ("v7" in kind or "7x" in kind) else 1
    if cout % (8 * nb) != 0:
        nb = 1
    return nb


def se_conv_bn(x_nchw, gate_nc11, w_oihw, gamma, beta):
    N, Cin, H, W = x_nchw.shape
    Cout = w_oihw.shape[0]
    assert N == 1, "kernel folds the SE gate into the weight; valid per-sample (N==1)"
    M = N * H * W

    # Pure reshapes only — no HBM transposes, no standalone cast ops.
    x_cm = x_nchw.reshape(Cin, M)                 # (Cin, M)
    gate = gate_nc11.reshape(1, Cin)              # (1, Cin)
    w = w_oihw.reshape(Cout, Cin)                 # (Cout, Cin)
    gb = jnp.stack([gamma.astype(jnp.float32),
                    beta.astype(jnp.float32)], axis=1)        # (Cout, 2)

    nb = _num_cout_blocks(Cout)
    cb = Cout // nb

    cost = pl.CostEstimate(
        flops=2 * Cout * Cin * M + 6 * Cout * M,
        transcendentals=Cin,
        bytes_accessed=int(
            x_cm.size * x_cm.dtype.itemsize
            + gate.size * gate.dtype.itemsize
            + w.size * w.dtype.itemsize
            + gb.size * 4
            + Cout * M * jnp.dtype(x_nchw.dtype).itemsize
        ),
    )

    vmem = pltpu.MemorySpace.VMEM
    out_cm = pl.pallas_call(
        se_conv_bn_kernel,
        out_shape=jax.ShapeDtypeStruct((Cout, M), x_nchw.dtype),
        grid=(nb,),
        in_specs=[
            pl.BlockSpec((Cin, M), lambda i: (0, 0), memory_space=vmem),
            pl.BlockSpec((1, Cin), lambda i: (0, 0), memory_space=vmem),
            pl.BlockSpec((cb, Cin), lambda i: (i, 0), memory_space=vmem),
            pl.BlockSpec((cb, 2), lambda i: (i, 0), memory_space=vmem),
        ],
        out_specs=pl.BlockSpec((cb, M), lambda i: (i, 0), memory_space=vmem),
        compiler_params=pltpu.CompilerParams(dimension_semantics=("parallel",)),
        cost_estimate=cost,
    )(x_cm, gate, w, gb)

    return out_cm.reshape(N, Cout, H, W)


def reference_f32(x_nchw, gate_nc11, w_oihw, gamma, beta):
    """Pure-JAX f32 reference of the PyTorch forward (training-mode BN)."""
    x = x_nchw * jax.nn.sigmoid(gate_nc11)
    y = jax.lax.conv_general_dilated(
        x, w_oihw, window_strides=(1, 1), padding="VALID",
        dimension_numbers=("NCHW", "OIHW", "NCHW"))
    mean = jnp.mean(y, axis=(0, 2, 3), keepdims=True)
    var = jnp.mean((y - mean) ** 2, axis=(0, 2, 3), keepdims=True)
    return (y - mean) * jax.lax.rsqrt(var + EPS) * gamma.reshape(1, -1, 1, 1) \
        + beta.reshape(1, -1, 1, 1)


def reference_bf16_matmul(x_nchw, gate_nc11, w_oihw, gamma, beta):
    """Same math as the kernel (gate folded into weight, bf16 MXU operands)."""
    N, Cin, H, W = x_nchw.shape
    Cout = w_oihw.shape[0]
    w_scaled = w_oihw.reshape(Cout, Cin) * jax.nn.sigmoid(gate_nc11.reshape(1, Cin))
    y = jnp.dot(w_scaled.astype(jnp.bfloat16),
                x_nchw.reshape(Cin, H * W).astype(jnp.bfloat16),
                preferred_element_type=jnp.float32)
    mean = jnp.mean(y, axis=1, keepdims=True)
    var = jnp.maximum(jnp.mean(y * y, axis=1, keepdims=True) - mean * mean, 0.0)
    out = y * (jax.lax.rsqrt(var + EPS) * gamma.reshape(Cout, 1)) \
        + (beta.reshape(Cout, 1) - mean * jax.lax.rsqrt(var + EPS) * gamma.reshape(Cout, 1))
    return out.reshape(N, Cout, H, W)


if __name__ == "__main__":
    key = jax.random.PRNGKey(0)
    k1, k2, k3 = jax.random.split(key, 3)

    # Shapes from the module spec (already small: ~0.5 MB activation).
    N, Cin, H, W, Cout = 1, 672, 14, 14, 112

    x166 = jax.random.normal(k1, (N, Cin, H, W), dtype=jnp.float32)
    x170 = jax.random.normal(k2, (N, Cin, 1, 1), dtype=jnp.float32)

    # Deterministic parameter init (Conv2d weight, bias=False; BN gamma=1, beta=0).
    w = jax.random.normal(k3, (Cout, Cin, 1, 1), dtype=jnp.float32) * 0.02
    gamma = jnp.ones((Cout,), dtype=jnp.float32)
    beta = jnp.zeros((Cout,), dtype=jnp.float32)

    out = jax.block_until_ready(se_conv_bn(x166, x170, w, gamma, beta))
    assert out.shape == (N, Cout, H, W)

    # Tight check vs. a reference using the same bf16 MXU operands (kernel-logic check).
    ref_bf16 = jax.block_until_ready(reference_bf16_matmul(x166, x170, w, gamma, beta))
    assert jnp.allclose(out, ref_bf16, atol=2e-3, rtol=2e-3)

    # Looser check vs. the full-f32 PyTorch-equivalent reference; slack covers only the
    # intentional bf16 rounding of MXU operands (f32 accumulation + f32 BN elsewhere).
    ref_f32 = jax.block_until_ready(reference_f32(x166, x170, w, gamma, beta))
    assert jnp.allclose(out, ref_f32, atol=2e-2, rtol=2e-2)

    print("KERNEL_OK")
</pallas_src>

<mosaic_0001>
module attributes {stable_mosaic.version = 11 : i64} {
  func.func @se_conv_bn_kernel(%arg0: i32, %arg1: memref<672x196xf32, #tpu.memory_space<vmem>>, %arg2: memref<1x672xf32, #tpu.memory_space<vmem>>, %arg3: memref<112x672xf32, #tpu.memory_space<vmem>>, %arg4: memref<112x2xf32, #tpu.memory_space<vmem>>, %arg5: memref<112x196xf32, #tpu.memory_space<vmem>>) attributes {dimension_semantics = [#tpu.dimension_semantics<parallel>], iteration_bounds = array<i64: 1>, scalar_prefetch = 0 : i64, scratch_operands = 0 : i64, tpu.core_type = #tpu.core_type<tc>, window_params = [{pipeline_mode = #tpu.pipeline_mode<synchronous>, transform_indices = @transform_0, window_bounds = array<i64: 672, 196>}, {pipeline_mode = #tpu.pipeline_mode<synchronous>, transform_indices = @transform_1, window_bounds = array<i64: 1, 672>}, {transform_indices = @transform_2, window_bounds = array<i64: 112, 672>}, {transform_indices = @transform_3, window_bounds = array<i64: 112, 2>}, {transform_indices = @transform_4, window_bounds = array<i64: 112, 196>}]} {
    %c0 = arith.constant 0 : index
    %c0_0 = arith.constant 0 : index
    %0 = vector.load %arg3[%c0, %c0_0] : memref<112x672xf32, #tpu.memory_space<vmem>>, vector<112x672xf32>
    %c0_1 = arith.constant 0 : index
    %c0_2 = arith.constant 0 : index
    %1 = vector.load %arg2[%c0_1, %c0_2] : memref<1x672xf32, #tpu.memory_space<vmem>>, vector<1x672xf32>
    %2 = arith.negf %1 : vector<1x672xf32>
    %3 = math.exp %2 : vector<1x672xf32>
    %cst = arith.constant 1.000000e+00 : f32
    %4 = vector.broadcast %cst : f32 to vector<1x672xf32>
    %5 = arith.addf %4, %3 : vector<1x672xf32>
    %6 = arith.divf %4, %5 : vector<1x672xf32>
    %7 = vector.broadcast %6 : vector<1x672xf32> to vector<112x672xf32>
    %8 = arith.mulf %0, %7 : vector<112x672xf32>
    %9 = arith.truncf %8 : vector<112x672xf32> to vector<112x672xbf16>
    %c0_3 = arith.constant 0 : index
    %c0_4 = arith.constant 0 : index
    %10 = vector.load %arg1[%c0_3, %c0_4] : memref<672x196xf32, #tpu.memory_space<vmem>>, vector<672x196xf32>
    %11 = arith.truncf %10 : vector<672x196xf32> to vector<672x196xbf16>
    %cst_5 = arith.constant dense<0.000000e+00> : vector<112x196xf32>
    %12 = tpu.matmul %9, %11, %cst_5 {dimension_numbers = #tpu.dot_dimension_numbers<[1], [0], [0], [1], [0, 0, 1, 1], [], []>} : vector<112x672xbf16>, vector<672x196xbf16>, vector<112x196xf32> -> vector<112x196xf32>
    %cst_6 = arith.constant dense<0.000000e+00> : vector<112xf32>
    %13 = vector.multi_reduction <add>, %12, %cst_6 [1] : vector<112x196xf32> to vector<112xf32>
    %14 = vector.shape_cast %13 : vector<112xf32> to vector<112x1xf32>
    %15 = arith.mulf %12, %12 : vector<112x196xf32>
    %cst_7 = arith.constant dense<0.000000e+00> : vector<112xf32>
    %16 = vector.multi_reduction <add>, %15, %cst_7 [1] : vector<112x196xf32> to vector<112xf32>
    %17 = vector.shape_cast %16 : vector<112xf32> to vector<112x1xf32>
    %cst_8 = arith.constant 0.00510204071 : f32
    %18 = vector.broadcast %cst_8 : f32 to vector<112x1xf32>
    %19 = arith.mulf %14, %18 : vector<112x1xf32>
    %cst_9 = arith.constant 0.00510204071 : f32
    %20 = vector.broadcast %cst_9 : f32 to vector<112x1xf32>
    %21 = arith.mulf %17, %20 : vector<112x1xf32>
    %22 = arith.mulf %19, %19 : vector<112x1xf32>
    %23 = arith.subf %21, %22 : vector<112x1xf32>
    %cst_10 = arith.constant 0.000000e+00 : f32
    %24 = vector.broadcast %cst_10 : f32 to vector<112x1xf32>
    %25 = arith.maximumf %23, %24 : vector<112x1xf32>
    %c0_11 = arith.constant 0 : index
    %c0_12 = arith.constant 0 : index
    %26 = vector.load %arg4[%c0_11, %c0_12] : memref<112x2xf32, #tpu.memory_space<vmem>>, vector<112x2xf32>
    %27 = vector.extract_strided_slice %26 {offsets = [0, 0], sizes = [112, 1], strides = [1, 1]} : vector<112x2xf32> to vector<112x1xf32>
    %28 = vector.extract_strided_slice %26 {offsets = [0, 1], sizes = [112, 1], strides = [1, 1]} : vector<112x2xf32> to vector<112x1xf32>
    %cst_13 = arith.constant 9.99999974E-6 : f32
    %29 = vector.broadcast %cst_13 : f32 to vector<112x1xf32>
    %30 = arith.addf %25, %29 : vector<112x1xf32>
    %31 = math.rsqrt %30 : vector<112x1xf32>
    %32 = arith.mulf %31, %27 : vector<112x1xf32>
    %33 = arith.mulf %19, %32 : vector<112x1xf32>
    %34 = arith.subf %28, %33 : vector<112x1xf32>
    %35 = vector.broadcast %32 : vector<112x1xf32> to vector<112x196xf32>
    %36 = arith.mulf %12, %35 : vector<112x196xf32>
    %37 = vector.broadcast %34 : vector<112x1xf32> to vector<112x196xf32>
    %38 = arith.addf %36, %37 : vector<112x196xf32>
    %c0_14 = arith.constant 0 : index
    %c0_15 = arith.constant 0 : index
    %39 = vector.load %arg5[%c0_14, %c0_15] : memref<112x196xf32, #tpu.memory_space<vmem>>, vector<112x196xf32>
    tpu.vector_store %arg5[%c0_14, %c0_15], %38 {strides = array<i32>} : memref<112x196xf32, #tpu.memory_space<vmem>>, vector<112x196xf32>,
    return
  }
  func.func @transform_0(%arg0: i32) -> (i32, i32) {
    %c0_i32 = arith.constant 0 : i32
    %c0_i32_0 = arith.constant 0 : i32
    %c0_i32_1 = arith.constant 0 : i32
    return %c0_i32, %c0_i32_0 : i32, i32
  }
  func.func @transform_1(%arg0: i32) -> (i32, i32) {
    %c0_i32 = arith.constant 0 : i32
    %c0_i32_0 = arith.constant 0 : i32
    %c0_i32_1 = arith.constant 0 : i32
    return %c0_i32, %c0_i32_0 : i32, i32
  }
  func.func @transform_2(%arg0: i32) -> (i32, i32) {
    %c0_i32 = arith.constant 0 : i32
    %c0_i32_0 = arith.constant 0 : i32
    return %arg0, %c0_i32 : i32, i32
  }
  func.func @transform_3(%arg0: i32) -> (i32, i32) {
    %c0_i32 = arith.constant 0 : i32
    %c0_i32_0 = arith.constant 0 : i32
    return %arg0, %c0_i32 : i32, i32
  }
  func.func @transform_4(%arg0: i32) -> (i32, i32) {
    %c0_i32 = arith.constant 0 : i32
    %c0_i32_0 = arith.constant 0 : i32
    return %arg0, %c0_i32 : i32, i32
  }
}

</mosaic_0001>

<bundles_post_ra>
// kernel: tpu_custom_call.1
= control target key start
LH: loop header
LB: loop body
LE: loop exit
PB: predicated region body
PF: predicated region fallthrough
CT: control target
= control target key end

     0   :  { %vm518_vm0 = vcmask 261120   ;;  %vm849_vm1 = vcmask 556032   ;;  %s1552_s18 = smov 1   ;;  %s3101_s0 = inlined_call_operand.vmem [shape: f32[672,196], index: 0, kind: input, shape index: {}]   ;;  %s3102_s1 = inlined_call_operand.vmem [shape: f32[1,672], index: 1, kind: input, shape index: {}]   ;;  %s3103_s2 = inlined_call_operand.vmem [shape: f32[112,672], index: 2, kind: input, shape index: {}]   ;;  %s3104_s3 = inlined_call_operand.vmem [shape: f32[112,2], index: 3, kind: input, shape index: {}]   ;;  %s3105_s4 = inlined_call_operand.vmem [shape: f32[112,196], index: 4, kind: output, shape index: {}]  }
   0x1   :  { %v267_v0 = vld [vmem:[%s3101_s0 + $0x8] sm:$0xff]  ;;  %v269_v1 = vld [vmem:[%s3101_s0 + $0x18] sm:$0xff]  ;;  %v266_v5 = vld [vmem:[%s3101_s0] sm:$0xff] }
   0x2   :  { %v331_v2 = vld [vmem:[%s3101_s0 + $0x208] sm:$0xff]  ;;  %v435_v3 = vpack.c.bf16 %v269_v1, %v267_v0  ;;  %v333_v4 = vld [vmem:[%s3101_s0 + $0x218] sm:$0xff]  ;;  %v268_v6 = vld [vmem:[%s3101_s0 + $0x10] sm:$0xff] }
   0x3   :  { %v467_v7 = vpack.c.bf16 %v333_v4, %v331_v2  ;;  %v434_v8 = vpack.c.bf16 %v268_v6, %v266_v5  ;;  %v330_v9 = vld [vmem:[%s3101_s0 + $0x200] sm:$0xff]  ;;  %v332_v10 = vld [vmem:[%s3101_s0 + $0x210] sm:$0xff]  ;;  %v271_v11 = vld [vmem:[%s3101_s0 + $0x28] sm:$0xff] }
   0x4   :  { %540 = vmatprep.subr.bf16.mxu1 %v435_v3  ;;  %v466_v12 = vpack.c.bf16 %v332_v10, %v330_v9  ;;  %v273_v13 = vld [vmem:[%s3101_s0 + $0x38] sm:$0xff]  ;;  %v335_v14 = vld [vmem:[%s3101_s0 + $0x228] sm:$0xff]  ;;  %v270_v18 = vld [vmem:[%s3101_s0 + $0x20] sm:$0xff] }
   0x5   :  { %v337_v15 = vld [vmem:[%s3101_s0 + $0x238] sm:$0xff]  ;;  %643 = vmatprep.subr.bf16.mxu0 %v467_v7  ;;  %541 = vmatpush1.bf16.msra.mxu1 %v434_v8  ;;  %v437_v16 = vpack.c.bf16 %v273_v13, %v271_v11  ;;  %v272_v19 = vld [vmem:[%s3101_s0 + $0x30] sm:$0xff]  ;;  %v334_v20 = vld [vmem:[%s3101_s0 + $0x220] sm:$0xff] }
   0x6   :  { %v469_v17 = vpack.c.bf16 %v337_v15, %v335_v14  ;;  %644 = vmatpush1.bf16.msra.mxu0 %v466_v12  ;;  %v436_v21 = vpack.c.bf16 %v272_v19, %v270_v18  ;;  %v336_v22 = vld [vmem:[%s3101_s0 + $0x230] sm:$0xff]  ;;  %v275_v23 = vld [vmem:[%s3101_s0 + $0x48] sm:$0xff]  ;;  %v277_v24 = vld [vmem:[%s3101_s0 + $0x58] sm:$0xff] }
   0x7   :  { %542 = vmatprep.subr.bf16.mxu1 %v437_v16  ;;  %v468_v25 = vpack.c.bf16 %v336_v22, %v334_v20  ;;  %v439_v26 = vpack.c.bf16 %v277_v24, %v275_v23  ;;  %v339_v27 = vld [vmem:[%s3101_s0 + $0x248] sm:$0xff]  ;;  %v341_v28 = vld [vmem:[%s3101_s0 + $0x258] sm:$0xff]  ;;  %v274_v29 = vld [vmem:[%s3101_s0 + $0x40] sm:$0xff] }
   0x8   :  { %645 = vmatprep.subr.bf16.mxu0 %v469_v17  ;;  %v471_v30 = vpack.c.bf16 %v341_v28, %v339_v27  ;;  %v276_v31 = vld [vmem:[%s3101_s0 + $0x50] sm:$0xff]  ;;  %v338_v32 = vld [vmem:[%s3101_s0 + $0x240] sm:$0xff]  ;;  %v279_v35 = vld [vmem:[%s3101_s0 + $0x68] sm:$0xff] }
   0x9   :  { %v340_v33 = vld [vmem:[%s3101_s0 + $0x250] sm:$0xff]  ;;  %543 = vmatpush1.bf16.msra.mxu1 %v436_v21  ;;  %v438_v34 = vpack.c.bf16 %v276_v31, %v274_v29  ;;  %v281_v36 = vld [vmem:[%s3101_s0 + $0x78] sm:$0xff]  ;;  %v343_v37 = vld [vmem:[%s3101_s0 + $0x268] sm:$0xff] }
   0xa   :  { %646 = vmatpush1.bf16.msra.mxu0 %v468_v25  ;;  %544 = vmatprep.subr.bf16.mxu1 %v439_v26  ;;  %v470_v38 = vpack.c.bf16 %v340_v33, %v338_v32  ;;  %v441_v39 = vpack.c.bf16 %v281_v36, %v279_v35  ;;  %v345_v40 = vld [vmem:[%s3101_s0 + $0x278] sm:$0xff]  ;;  %v278_v41 = vld [vmem:[%s3101_s0 + $0x60] sm:$0xff]  ;;  %v280_v42 = vld [vmem:[%s3101_s0 + $0x70] sm:$0xff] }
   0xb   :  { %647 = vmatprep.subr.bf16.mxu0 %v471_v30  ;;  %v473_v43 = vpack.c.bf16 %v345_v40, %v343_v37  ;;  %v342_v44 = vld [vmem:[%s3101_s0 + $0x260] sm:$0xff]  ;;  %v344_v45 = vld [vmem:[%s3101_s0 + $0x270] sm:$0xff]  ;;  %v283_v46 = vld [vmem:[%s3101_s0 + $0x88] sm:$0xff]  ;;  %v440_v50 = vpack.c.bf16 %v280_v42, %v278_v41 }
   0xc   :  { %v285_v47 = vld [vmem:[%s3101_s0 + $0x98] sm:$0xff]  ;;  %v347_v48 = vld [vmem:[%s3101_s0 + $0x288] sm:$0xff]  ;;  %v472_v51 = vpack.c.bf16 %v344_v45, %v342_v44  ;;  %v282_v53 = vld [vmem:[%s3101_s0 + $0x80] sm:$0xff] }
   0xd   :  { %v349_v49 = vld [vmem:[%s3101_s0 + $0x298] sm:$0xff]  ;;  %545 = vmatpush1.bf16.msra.mxu1 %v438_v34  ;;  %v443_v52 = vpack.c.bf16 %v285_v47, %v283_v46  ;;  %v284_v54 = vld [vmem:[%s3101_s0 + $0x90] sm:$0xff]  ;;  %v346_v55 = vld [vmem:[%s3101_s0 + $0x280] sm:$0xff] }
   0xe   :  { %648 = vmatpush1.bf16.msra.mxu0 %v470_v38  ;;  %546 = vmatprep.subr.bf16.mxu1 %v441_v39  ;;  %v475_v56 = vpack.c.bf16 %v349_v49, %v347_v48  ;;  %v348_v57 = vld [vmem:[%s3101_s0 + $0x290] sm:$0xff]  ;;  %v287_v58 = vld [vmem:[%s3101_s0 + $0xa8] sm:$0xff]  ;;  %v289_v59 = vld [vmem:[%s3101_s0 + $0xb8] sm:$0xff]  ;;  %v442_v62 = vpack.c.bf16 %v284_v54, %v282_v53 }
   0xf   :  { %649 = vmatprep.subr.bf16.mxu0 %v473_v43  ;;  %v351_v60 = vld [vmem:[%s3101_s0 + $0x2a8] sm:$0xff]  ;;  %v353_v61 = vld [vmem:[%s3101_s0 + $0x2b8] sm:$0xff]  ;;  %v474_v63 = vpack.c.bf16 %v348_v57, %v346_v55  ;;  %v445_v0 = vpack.c.bf16 %v289_v59, %v287_v58  ;;  %v286_v1 = vld [vmem:[%s3101_s0 + $0xa0] sm:$0xff] }
  0x10   :  { %v288_v2 = vld [vmem:[%s3101_s0 + $0xb0] sm:$0xff]  ;;  %v350_v3 = vld [vmem:[%s3101_s0 + $0x2a0] sm:$0xff]  ;;  %v477_v4 = vpack.c.bf16 %v353_v61, %v351_v60  ;;  %v291_v6 = vld [vmem:[%s3101_s0 + $0xc8] sm:$0xff] }
  0x11   :  { %547 = vmatpush1.bf16.msra.mxu1 %v440_v50  ;;  %v352_v5 = vld [vmem:[%s3101_s0 + $0x2b0] sm:$0xff]  ;;  %v293_v7 = vld [vmem:[%s3101_s0 + $0xd8] sm:$0xff]  ;;  %v355_v8 = vld [vmem:[%s3101_s0 + $0x2c8] sm:$0xff]  ;;  %v444_v10 = vpack.c.bf16 %v288_v2, %v286_v1 }
  0x12   :  { %650 = vmatpush1.bf16.msra.mxu0 %v472_v51  ;;  %548 = vmatprep.subr.bf16.mxu1 %v443_v52  ;;  %v357_v9 = vld [vmem:[%s3101_s0 + $0x2d8] sm:$0xff]  ;;  %v476_v11 = vpack.c.bf16 %v352_v5, %v350_v3  ;;  %v447_v12 = vpack.c.bf16 %v293_v7, %v291_v6  ;;  %v290_v13 = vld [vmem:[%s3101_s0 + $0xc0] sm:$0xff]  ;;  %v292_v14 = vld [vmem:[%s3101_s0 + $0xd0] sm:$0xff] }
  0x13   :  { %651 = vmatprep.subr.bf16.mxu0 %v475_v56  ;;  %v354_v15 = vld [vmem:[%s3101_s0 + $0x2c0] sm:$0xff]  ;;  %v479_v16 = vpack.c.bf16 %v357_v9, %v355_v8  ;;  %v356_v17 = vld [vmem:[%s3101_s0 + $0x2d0] sm:$0xff]  ;;  %v295_v18 = vld [vmem:[%s3101_s0 + $0xe8] sm:$0xff]  ;;  %v446_v22 = vpack.c.bf16 %v292_v14, %v290_v13 }
  0x14   :  { %v297_v19 = vld [vmem:[%s3101_s0 + $0xf8] sm:$0xff]  ;;  %v359_v20 = vld [vmem:[%s3101_s0 + $0x2e8] sm:$0xff]  ;;  %v478_v23 = vpack.c.bf16 %v356_v17, %v354_v15  ;;  %v294_v25 = vld [vmem:[%s3101_s0 + $0xe0] sm:$0xff] }
  0x15   :  { %549 = vmatpush1.bf16.msra.mxu1 %v442_v62  ;;  %v361_v21 = vld [vmem:[%s3101_s0 + $0x2f8] sm:$0xff]  ;;  %v449_v24 = vpack.c.bf16 %v297_v19, %v295_v18  ;;  %v296_v26 = vld [vmem:[%s3101_s0 + $0xf0] sm:$0xff]  ;;  %v358_v27 = vld [vmem:[%s3101_s0 + $0x2e0] sm:$0xff] }
  0x16   :  { %652 = vmatpush1.bf16.msra.mxu0 %v474_v63  ;;  %550 = vmatprep.subr.bf16.mxu1 %v445_v0  ;;  %v481_v28 = vpack.c.bf16 %v361_v21, %v359_v20  ;;  %v360_v29 = vld [vmem:[%s3101_s0 + $0x2f0] sm:$0xff]  ;;  %v299_v30 = vld [vmem:[%s3101_s0 + $0x108] sm:$0xff]  ;;  %v301_v31 = vld [vmem:[%s3101_s0 + $0x118] sm:$0xff]  ;;  %v448_v34 = vpack.c.bf16 %v296_v26, %v294_v25 }
  0x17   :  { %653 = vmatprep.subr.bf16.mxu0 %v477_v4  ;;  %v363_v32 = vld [vmem:[%s3101_s0 + $0x308] sm:$0xff]  ;;  %v365_v33 = vld [vmem:[%s3101_s0 + $0x318] sm:$0xff]  ;;  %v480_v35 = vpack.c.bf16 %v360_v29, %v358_v27  ;;  %v451_v36 = vpack.c.bf16 %v301_v31, %v299_v30  ;;  %v298_v37 = vld [vmem:[%s3101_s0 + $0x100] sm:$0xff] }
  0x18   :  { %v300_v38 = vld [vmem:[%s3101_s0 + $0x110] sm:$0xff]  ;;  %v362_v39 = vld [vmem:[%s3101_s0 + $0x300] sm:$0xff]  ;;  %v483_v40 = vpack.c.bf16 %v365_v33, %v363_v32  ;;  %v303_v42 = vld [vmem:[%s3101_s0 + $0x128] sm:$0xff] }
  0x19   :  { %551 = vmatpush1.bf16.msra.mxu1 %v444_v10  ;;  %v364_v41 = vld [vmem:[%s3101_s0 + $0x310] sm:$0xff]  ;;  %v305_v43 = vld [vmem:[%s3101_s0 + $0x138] sm:$0xff]  ;;  %v367_v44 = vld [vmem:[%s3101_s0 + $0x328] sm:$0xff]  ;;  %v450_v46 = vpack.c.bf16 %v300_v38, %v298_v37 }
  0x1a   :  { %654 = vmatpush1.bf16.msra.mxu0 %v476_v11  ;;  %552 = vmatprep.subr.bf16.mxu1 %v447_v12  ;;  %v369_v45 = vld [vmem:[%s3101_s0 + $0x338] sm:$0xff]  ;;  %v482_v47 = vpack.c.bf16 %v364_v41, %v362_v39  ;;  %v453_v48 = vpack.c.bf16 %v305_v43, %v303_v42  ;;  %v302_v49 = vld [vmem:[%s3101_s0 + $0x120] sm:$0xff]  ;;  %v304_v50 = vld [vmem:[%s3101_s0 + $0x130] sm:$0xff] }
  0x1b   :  { %655 = vmatprep.subr.bf16.mxu0 %v479_v16  ;;  %v366_v51 = vld [vmem:[%s3101_s0 + $0x320] sm:$0xff]  ;;  %v485_v52 = vpack.c.bf16 %v369_v45, %v367_v44  ;;  %v368_v53 = vld [vmem:[%s3101_s0 + $0x330] sm:$0xff]  ;;  %v307_v54 = vld [vmem:[%s3101_s0 + $0x148] sm:$0xff]  ;;  %v452_v58 = vpack.c.bf16 %v304_v50, %v302_v49 }
  0x1c   :  { %v309_v55 = vld [vmem:[%s3101_s0 + $0x158] sm:$0xff]  ;;  %v371_v56 = vld [vmem:[%s3101_s0 + $0x348] sm:$0xff]  ;;  %v484_v59 = vpack.c.bf16 %v368_v53, %v366_v51  ;;  %v306_v61 = vld [vmem:[%s3101_s0 + $0x140] sm:$0xff] }
  0x1d   :  { %553 = vmatpush1.bf16.msra.mxu1 %v446_v22  ;;  %v373_v57 = vld [vmem:[%s3101_s0 + $0x358] sm:$0xff]  ;;  %v455_v60 = vpack.c.bf16 %v309_v55, %v307_v54  ;;  %v308_v62 = vld [vmem:[%s3101_s0 + $0x150] sm:$0xff]  ;;  %v370_v63 = vld [vmem:[%s3101_s0 + $0x340] sm:$0xff] }
  0x1e   :  { %656 = vmatpush1.bf16.msra.mxu0 %v478_v23  ;;  %554 = vmatprep.subr.bf16.mxu1 %v449_v24  ;;  %v487_v0 = vpack.c.bf16 %v373_v57, %v371_v56  ;;  %v372_v1 = vld [vmem:[%s3101_s0 + $0x350] sm:$0xff]  ;;  %v311_v2 = vld [vmem:[%s3101_s0 + $0x168] sm:$0xff]  ;;  %v313_v3 = vld [vmem:[%s3101_s0 + $0x178] sm:$0xff]  ;;  %v454_v6 = vpack.c.bf16 %v308_v62, %v306_v61 }
  0x1f   :  { %657 = vmatprep.subr.bf16.mxu0 %v481_v28  ;;  %v375_v4 = vld [vmem:[%s3101_s0 + $0x368] sm:$0xff]  ;;  %v377_v5 = vld [vmem:[%s3101_s0 + $0x378] sm:$0xff]  ;;  %v486_v7 = vpack.c.bf16 %v372_v1, %v370_v63  ;;  %v457_v8 = vpack.c.bf16 %v313_v3, %v311_v2  ;;  %v310_v9 = vld [vmem:[%s3101_s0 + $0x160] sm:$0xff]  ;;  %v110_v2 = vlaneseq }
  0x20   :  { %v312_v10 = vld [vmem:[%s3101_s0 + $0x170] sm:$0xff]  ;;  %v374_v11 = vld [vmem:[%s3101_s0 + $0x360] sm:$0xff]  ;;  %v489_v12 = vpack.c.bf16 %v377_v5, %v375_v4  ;;  %v315_v14 = vld [vmem:[%s3101_s0 + $0x188] sm:$0xff] }
  0x21   :  { %555 = vmatpush1.bf16.msra.mxu1 %v448_v34  ;;  %v376_v13 = vld [vmem:[%s3101_s0 + $0x370] sm:$0xff]  ;;  %v317_v15 = vld [vmem:[%s3101_s0 + $0x198] sm:$0xff]  ;;  %v379_v16 = vld [vmem:[%s3101_s0 + $0x388] sm:$0xff]  ;;  %v456_v19 = vpack.c.bf16 %v312_v10, %v310_v9 }
  0x22   :  { %658 = vmatpush1.bf16.msra.mxu0 %v480_v35  ;;  %556 = vmatprep.subr.bf16.mxu1 %v451_v36  ;;  %v381_v17 = vld [vmem:[%s3101_s0 + $0x398] sm:$0xff]  ;;  %v102_v18 = vld [vmem:[%s3102_s1] sm:$0x3f]  ;;  %v488_v21 = vpack.c.bf16 %v376_v13, %v374_v11  ;;  %v459_v22 = vpack.c.bf16 %v317_v15, %v315_v14  ;;  %v316_v24 = vld [vmem:[%s3101_s0 + $0x190] sm:$0xff] }
  0x23   :  { %659 = vmatprep.subr.bf16.mxu0 %v483_v40  ;;  %v1428_v20 = vmul.f32 -1.442695, %v102_v18  ;;  %v314_v23 = vld [vmem:[%s3101_s0 + $0x180] sm:$0xff]  ;;  %v491_v26 = vpack.c.bf16 %v381_v17, %v379_v16  ;;  %v380_v27 = vld [vmem:[%s3101_s0 + $0x390] sm:$0xff]  ;;  %v319_v28 = vld [vmem:[%s3101_s0 + $0x1a8] sm:$0xff] }
  0x24   :  { %v378_v25 = vld [vmem:[%s3101_s0 + $0x380] sm:$0xff]  ;;  %v321_v29 = vld [vmem:[%s3101_s0 + $0x1b8] sm:$0xff]  ;;  %v383_v30 = vld [vmem:[%s3101_s0 + $0x3a8] sm:$0xff]  ;;  %v458_v32 = vpack.c.bf16 %v316_v24, %v314_v23 }
  0x25   :  { %557 = vmatpush1.bf16.msra.mxu1 %v450_v46  ;;  %1519 = vpow2.f32 %v1428_v20  ;;  %v385_v31 = vld [vmem:[%s3101_s0 + $0x3b8] sm:$0xff]  ;;  %v490_v33 = vpack.c.bf16 %v380_v27, %v378_v25  ;;  %v461_v34 = vpack.c.bf16 %v321_v29, %v319_v28  ;;  %v318_v35 = vld [vmem:[%s3101_s0 + $0x1a0] sm:$0xff]  ;;  %v320_v36 = vld [vmem:[%s3101_s0 + $0x1b0] sm:$0xff] }
  0x26   :  { %660 = vmatpush1.bf16.msra.mxu0 %v482_v47  ;;  %558 = vmatprep.subr.bf16.mxu1 %v453_v48  ;;  %v382_v37 = vld [vmem:[%s3101_s0 + $0x3a0] sm:$0xff]  ;;  %v493_v38 = vpack.c.bf16 %v385_v31, %v383_v30  ;;  %v384_v39 = vld [vmem:[%s3101_s0 + $0x3b0] sm:$0xff]  ;;  %v323_v40 = vld [vmem:[%s3101_s0 + $0x1c8] sm:$0xff]  ;;  %v460_v44 = vpack.c.bf16 %v320_v36, %v318_v35 }
  0x27   :  { %661 = vmatprep.subr.bf16.mxu0 %v485_v52  ;;  %v325_v41 = vld [vmem:[%s3101_s0 + $0x1d8] sm:$0xff]  ;;  %v387_v42 = vld [vmem:[%s3101_s0 + $0x3c8] sm:$0xff]  ;;  %v492_v45 = vpack.c.bf16 %v384_v39, %v382_v37  ;;  %v322_v47 = vld [vmem:[%s3101_s0 + $0x1c0] sm:$0xff] }
  0x28   :  { %v389_v43 = vld [vmem:[%s3101_s0 + $0x3d8] sm:$0xff]  ;;  %v463_v46 = vpack.c.bf16 %v325_v41, %v323_v40  ;;  %v324_v48 = vld [vmem:[%s3101_s0 + $0x1d0] sm:$0xff]  ;;  %v386_v49 = vld [vmem:[%s3101_s0 + $0x3c0] sm:$0xff] }
  0x29   :  { %559 = vmatpush1.bf16.msra.mxu1 %v452_v58  ;;  %v495_v50 = vpack.c.bf16 %v389_v43, %v387_v42  ;;  %v388_v51 = vld [vmem:[%s3101_s0 + $0x3d0] sm:$0xff]  ;;  %v327_v52 = vld [vmem:[%s3101_s0 + $0x1e8] sm:$0xff]  ;;  %v329_v53 = vld [vmem:[%s3101_s0 + $0x1f8] sm:$0xff]  ;;  %v462_v57 = vpack.c.bf16 %v324_v48, %v322_v47 }
  0x2a   :  { %662 = vmatpush1.bf16.msra.mxu0 %v484_v59  ;;  %560 = vmatprep.subr.bf16.mxu1 %v455_v60  ;;  %v391_v54 = vld [vmem:[%s3101_s0 + $0x3e8] sm:$0xff]  ;;  %v393_v55 = vld [vmem:[%s3101_s0 + $0x3f8] sm:$0xff]  ;;  %v494_v58 = vpack.c.bf16 %v388_v51, %v386_v49  ;;  %v465_v59 = vpack.c.bf16 %v329_v53, %v327_v52  ;;  %v326_v60 = vld [vmem:[%s3101_s0 + $0x1e0] sm:$0xff] }
  0x2b   :  { %663 = vmatprep.subr.bf16.mxu0 %v487_v0  ;;  %v328_v61 = vld [vmem:[%s3101_s0 + $0x1f0] sm:$0xff]  ;;  %v390_v62 = vld [vmem:[%s3101_s0 + $0x3e0] sm:$0xff]  ;;  %v497_v0 = vpack.c.bf16 %v393_v55, %v391_v54  ;;  %v395_v3 = vld [vmem:[%s3101_s0 + $0x408] sm:$0xff] }
  0x2c   :  { %v392_v1 = vld [vmem:[%s3101_s0 + $0x3f0] sm:$0xff]  ;;  %v397_v4 = vld [vmem:[%s3101_s0 + $0x418] sm:$0xff]  ;;  %v464_v5 = vpack.c.bf16 %v328_v61, %v326_v60  ;;  %v19_v13 = vld [vmem:[%s3103_s2 + $0x8] sm:$0xff] }
  0x2d   :  { %561 = vmatpush1.bf16.msra.mxu1 %v454_v6  ;;  %v496_v6 = vpack.c.bf16 %v392_v1, %v390_v62  ;;  %v25_v14 = vld [vmem:[%s3103_s2 + $0x38] sm:$0xff]  ;;  %v394_v15 = vld [vmem:[%s3101_s0 + $0x400] sm:$0xff]  ;;  %v396_v16 = vld [vmem:[%s3101_s0 + $0x410] sm:$0xff] }
  0x2e   :  { %664 = vmatpush1.bf16.msra.mxu0 %v486_v7  ;;  %562 = vmatprep.subr.bf16.mxu1 %v457_v8  ;;  %v499_v7 = vpack.c.bf16 %v397_v4, %v395_v3  ;;  %v1972_v8 = vshrl.u32 %v110_v2, 7  ;;  %v399_v17 = vld [vmem:[%s3101_s0 + $0x428] sm:$0xff]  ;;  %v401_v18 = vld [vmem:[%s3101_s0 + $0x438] sm:$0xff]  ;;  %v24_v25 = vld [vmem:[%s3103_s2 + $0x30] sm:$0xff]  ;;  %v498_v30 = vpack.c.bf16 %v396_v16, %v394_v15 }
  0x2f   :  { %665 = vmatprep.subr.bf16.mxu0 %v489_v12  ;;  %v1520_v56 = vpop.eup %1519  ;;  %v21_v20 = vld [vmem:[%s3103_s2 + $0x18] sm:$0xff]  ;;  %v20_v27 = vld [vmem:[%s3103_s2 + $0x10] sm:$0xff]  ;;  %v26_v28 = vld [vmem:[%s3103_s2 + $0x40] sm:$0xff]  ;;  %v501_v31 = vpack.c.bf16 %v401_v18, %v399_v17 }
  0x30   :  { %v106_v63 = vadd.f32 1.0, %v1520_v56  ;;  %v116_v9 = vsub.s32 1, %v1972_v8  ;;  %v124_v10 = vsub.s32 3, %v1972_v8  ;;  %v112_v11 = vsub.s32 0, %v1972_v8  ;;  %v39_v39 = vld [vmem:[%s3103_s2 + $0xa8] sm:$0xff]  ;;  %v400_v51 = vld [vmem:[%s3101_s0 + $0x430] sm:$0xff] }
  0x31   :  { %563 = vmatpush1.bf16.msra.mxu1 %v456_v19  ;;  %v120_v12 = vsub.s32 2, %v1972_v8  ;;  %v32_v52 = vld [vmem:[%s3103_s2 + $0x70] sm:$0xff]  ;;  %v38_v53 = vld [vmem:[%s3103_s2 + $0xa0] sm:$0xff]  ;;  %v49_v60 = vld [vmem:[%s3103_s2 + $0xf8] sm:$0xff] }
  0x32   :  { %666 = vmatpush1.bf16.msra.mxu0 %v488_v21  ;;  %564 = vmatprep.subr.bf16.mxu1 %v459_v22  ;;  %1521 = vrcp.f32 %v106_v63  ;;  %v27_v21 = vld [vmem:[%s3103_s2 + $0x48] sm:$0xff]  ;;  %v18_v22 = vld [vmem:[%s3103_s2] sm:$0xff]  ;;  %v45_v1 = vld [vmem:[%s3103_s2 + $0xd8] sm:$0xff] }
  0x33   :  { %667 = vmatprep.subr.bf16.mxu0 %v491_v26  ;;  %v51_v2 = vld [vmem:[%s3103_s2 + $0x108] sm:$0xff]  ;;  %v42_v15 = vld [vmem:[%s3103_s2 + $0xc0] sm:$0xff]  ;;  %v48_v16 = vld [vmem:[%s3103_s2 + $0xf0] sm:$0xff] }
  0x34   :  { %v407_v17 = vld [vmem:[%s3101_s0 + $0x468] sm:$0xff] }
  0x35   :  { %565 = vmatpush1.bf16.msra.mxu1 %v458_v32  ;;  %v31_v32 = vld [vmem:[%s3103_s2 + $0x68] sm:$0xff] }
  0x36   :  { %668 = vmatpush1.bf16.msra.mxu0 %v490_v33  ;;  %566 = vmatprep.subr.bf16.mxu1 %v461_v34  ;;  %v37_v33 = vld [vmem:[%s3103_s2 + $0x98] sm:$0xff] }
  0x37   :  { %669 = vmatprep.subr.bf16.mxu0 %v493_v38  ;;  %v33_v38 = vld [vmem:[%s3103_s2 + $0x78] sm:$0xff] }
  0x39   :  { %567 = vmatpush1.bf16.msra.mxu1 %v460_v44  ;;  %v398_v44 = vld [vmem:[%s3101_s0 + $0x420] sm:$0xff] }
  0x3a   :  { %670 = vmatpush1.bf16.msra.mxu0 %v492_v45  ;;  %568 = vmatprep.subr.bf16.mxu1 %v463_v46  ;;  %v30_v45 = vld [vmem:[%s3103_s2 + $0x60] sm:$0xff]  ;;  %v36_v46 = vld [vmem:[%s3103_s2 + $0x90] sm:$0xff] }
  0x3b   :  { %671 = vmatprep.subr.bf16.mxu0 %v495_v50 }
  0x3c   :  { %v1996_v19 = vpop.eup %1521 }
  0x3d   :  { %569 = vmatpush1.bf16.msra.mxu1 %v462_v57  ;;  %v2008_v23 = vrot.slane %v1996_v19, %v116_v9  ;;  %v2011_v24 = vrot.slane %v1996_v19, %v124_v10  ;;  %v2017_v26 = vrot.slane %v1996_v19, %v112_v11  ;;  %v2026_v29 = vrot.slane %v1996_v19, %v120_v12  ;;  %v402_v11 = vld [vmem:[%s3101_s0 + $0x440] sm:$0xff]  ;;  %v404_v12 = vld [vmem:[%s3101_s0 + $0x450] sm:$0xff] }
  0x3e   :  { %672 = vmatpush1.bf16.msra.mxu0 %v494_v58  ;;  %570 = vmatprep.subr.bf16.mxu1 %v465_v59  ;;  %v403_v58 = vld [vmem:[%s3101_s0 + $0x448] sm:$0xff] }
  0x3f   :  { %673 = vmatprep.subr.bf16.mxu0 %v497_v0  ;;  %v141_v34 = vmul.f32 %v2008_v23, %v19_v13  ;;  %v147_v35 = vmul.f32 %v2008_v23, %v25_v14  ;;  %v143_v36 = vmul.f32 %v2011_v24, %v21_v20  ;;  %v149_v37 = vmul.f32 %v2011_v24, %v27_v21  ;;  %v43_v59 = vld [vmem:[%s3103_s2 + $0xc8] sm:$0xff]  ;;  %v405_v0 = vld [vmem:[%s3101_s0 + $0x458] sm:$0xff] }
  0x40   :  { %v140_v40 = vmul.f32 %v2017_v26, %v18_v22  ;;  %v146_v41 = vmul.f32 %v2017_v26, %v24_v25  ;;  %v142_v42 = vmul.f32 %v2026_v29, %v20_v27  ;;  %v148_v43 = vmul.f32 %v2026_v29, %v26_v28  ;;  %v409_v21 = vld [vmem:[%s3101_s0 + $0x478] sm:$0xff]  ;;  %v406_v22 = vld [vmem:[%s3101_s0 + $0x460] sm:$0xff]  ;;  %v408_v25 = vld [vmem:[%s3101_s0 + $0x470] sm:$0xff] }
  0x41   :  { %571 = vmatpush1.bf16.msra.mxu1 %v464_v5  ;;  %v225_v47 = vpack.c.bf16 %v147_v35, %v141_v34  ;;  %v227_v48 = vpack.c.bf16 %v149_v37, %v143_v36  ;;  %v153_v49 = vmul.f32 %v2008_v23, %v31_v32  ;;  %v159_v50 = vmul.f32 %v2008_v23, %v37_v33  ;;  %v55_v32 = vld [vmem:[%s3103_s2 + $0x128] sm:$0xff]  ;;  %v61_v34 = vld [vmem:[%s3103_s2 + $0x158] sm:$0xff] }
  0x42   :  { %674 = vmatpush1.bf16.msra.mxu0 %v496_v6  ;;  %1436 = vmatprep.subr.bf16.mxu1 %v499_v7  ;;  %v224_v54 = vpack.c.bf16 %v146_v41, %v140_v40  ;;  %v226_v55 = vpack.c.bf16 %v148_v43, %v142_v42  ;;  %v155_v56 = vmul.f32 %v2011_v24, %v33_v38  ;;  %v57_v35 = vld [vmem:[%s3103_s2 + $0x138] sm:$0xff]  ;;  %v63_v36 = vld [vmem:[%s3103_s2 + $0x168] sm:$0xff] }
  0x43   :  { %746 = vmatprep.subr.bf16.mxu0 %v499_v7  ;;  %v161_v57 = vmul.f32 %v2011_v24, %v39_v39  ;;  %572 = vmatprep.mubr.bf16.mxu1 %v225_v47  ;;  %v231_v61 = vpack.c.bf16 %v159_v50, %v153_v49  ;;  %v152_v62 = vmul.f32 %v2017_v26, %v30_v45  ;;  %v411_v41 = vld [vmem:[%s3101_s0 + $0x488] sm:$0xff]  ;;  %v413_v42 = vld [vmem:[%s3101_s0 + $0x498] sm:$0xff]  ;;  %v54_v50 = vld [vmem:[%s3103_s2 + $0x120] sm:$0xff] }
  0x44   :  { %675 = vmatprep.mubr.bf16.mxu0 %v227_v48  ;;  %v158_v63 = vmul.f32 %v2017_v26, %v36_v46  ;;  %573 = vmatmul.mubr.bf16.vlgmr.msra.gmra.mrb[0].mxu1 %v224_v54  ;;  %v154_v4 = vmul.f32 %v2026_v29, %v32_v52  ;;  %v160_v5 = vmul.f32 %v2026_v29, %v38_v53  ;;  %v412_v52 = vld [vmem:[%s3101_s0 + $0x490] sm:$0xff] }
  0x45   :  { %676 = vmatmul.mubr.bf16.vlgmr.msra.gmra.mrb[0].mxu0 %v226_v55  ;;  %v233_v3 = vpack.c.bf16 %v161_v57, %v155_v56  ;;  %1446 = vmatpush1.bf16.msra.mxu1 %v498_v30  ;;  %v500_v6 = vpack.c.bf16 %v400_v51, %v398_v44  ;;  %v165_v7 = vmul.f32 %v2008_v23, %v43_v59  ;;  %v410_v51 = vld [vmem:[%s3101_s0 + $0x480] sm:$0xff]  ;;  %v60_v55 = vld [vmem:[%s3103_s2 + $0x150] sm:$0xff]  ;;  %v415_v56 = vld [vmem:[%s3101_s0 + $0x4a8] sm:$0xff] }
  0x46   :  { %747 = vmatpush1.bf16.msra.mxu0 %v498_v30  ;;  %v171_v9 = vmul.f32 %v2008_v23, %v49_v60  ;;  %1437 = vmatprep.subr.bf16.mxu1 %v501_v31  ;;  %v503_v10 = vpack.c.bf16 %v405_v0, %v403_v58  ;;  %v167_v13 = vmul.f32 %v2011_v24, %v45_v1  ;;  %v44_v30 = vld [vmem:[%s3103_s2 + $0xd0] sm:$0xff]  ;;  %v417_v57 = vld [vmem:[%s3101_s0 + $0x4b8] sm:$0xff] }
  0x47   :  { %582 = vmatprep.mubr.bf16.mxu1 %v231_v61  ;;  %v173_v14 = vmul.f32 %v2011_v24, %v51_v2  ;;  %685 = vmatprep.mubr.bf16.mxu0 %v233_v3  ;;  %v230_v18 = vpack.c.bf16 %v158_v63, %v152_v62  ;;  %v232_v20 = vpack.c.bf16 %v160_v5, %v154_v4  ;;  %v56_v60 = vld [vmem:[%s3103_s2 + $0x130] sm:$0xff]  ;;  %v62_v61 = vld [vmem:[%s3103_s2 + $0x160] sm:$0xff]  ;;  %v67_v62 = vld [vmem:[%s3103_s2 + $0x188] sm:$0xff] }
  0x48   :  { %748 = vmatprep.subr.bf16.mxu0 %v501_v31  ;;  %v502_v27 = vpack.c.bf16 %v404_v12, %v402_v11  ;;  %v237_v28 = vpack.c.bf16 %v171_v9, %v165_v7  ;;  %v50_v31 = vld [vmem:[%s3103_s2 + $0x100] sm:$0xff]  ;;  %v164_v37 = vmul.f32 %v2017_v26, %v42_v15  ;;  %v170_v38 = vmul.f32 %v2017_v26, %v48_v16  ;;  %v73_v0 = vld [vmem:[%s3103_s2 + $0x1b8] sm:$0xff]  ;;  %v75_v2 = vld [vmem:[%s3103_s2 + $0x1c8] sm:$0xff] }
  0x49   :  { %1447 = vmatpush1.bf16.msra.mxu1 %v500_v6  ;;  %v239_v33 = vpack.c.bf16 %v173_v14, %v167_v13  ;;  %v505_v39 = vpack.c.bf16 %v409_v21, %v407_v17  ;;  %v504_v40 = vpack.c.bf16 %v408_v25, %v406_v22  ;;  %v166_v43 = vmul.f32 %v2026_v29, %v44_v30  ;;  %v69_v1 = vld [vmem:[%s3103_s2 + $0x198] sm:$0xff]  ;;  %v416_v7 = vld [vmem:[%s3101_s0 + $0x4b0] sm:$0xff]  ;;  %v419_v12 = vld [vmem:[%s3101_s0 + $0x4c8] sm:$0xff] }
  0x4a   :  { %749 = vmatpush1.bf16.msra.mxu0 %v500_v6  ;;  %1438 = vmatprep.subr.bf16.mxu1 %v503_v10  ;;  %v172_v44 = vmul.f32 %v2026_v29, %v50_v31  ;;  %v177_v45 = vmul.f32 %v2008_v23, %v55_v32  ;;  %v183_v46 = vmul.f32 %v2008_v23, %v61_v34  ;;  %v414_v6 = vld [vmem:[%s3101_s0 + $0x4a0] sm:$0xff]  ;;  %v421_v13 = vld [vmem:[%s3101_s0 + $0x4d8] sm:$0xff]  ;;  %v423_v21 = vld [vmem:[%s3101_s0 + $0x4e8] sm:$0xff]  ;;  %v128_v34 = vsub.s32 4, %v1972_v8 }
  0x4b   :  { %750 = vmatprep.subr.bf16.mxu0 %v503_v10  ;;  %v179_v47 = vmul.f32 %v2011_v24, %v57_v35  ;;  %v185_v48 = vmul.f32 %v2011_v24, %v63_v36  ;;  %v507_v49 = vpack.c.bf16 %v413_v42, %v411_v41  ;;  %v236_v53 = vpack.c.bf16 %v170_v38, %v164_v37  ;;  %v66_v17 = vld [vmem:[%s3103_s2 + $0x180] sm:$0xff]  ;;  %v425_v25 = vld [vmem:[%s3101_s0 + $0x4f8] sm:$0xff]  ;;  %v72_v30 = vld [vmem:[%s3103_s2 + $0x1b0] sm:$0xff] }
  0x4c   :  { %583 = vmatmul.mubr.bf16.gmra.mrb[4].mxu1 %v230_v18  ;;  %v238_v54 = vpack.c.bf16 %v172_v44, %v166_v43  ;;  %v243_v58 = vpack.c.bf16 %v183_v46, %v177_v45  ;;  %v506_v63 = vpack.c.bf16 %v412_v52, %v410_v51  ;;  %v2189_v3 = vmul.f32 %v2017_v26, %v54_v50  ;;  %v418_v18 = vld [vmem:[%s3101_s0 + $0x4c0] sm:$0xff]  ;;  %v68_v31 = vld [vmem:[%s3103_s2 + $0x190] sm:$0xff]  ;;  %v79_v38 = vld [vmem:[%s3103_s2 + $0x1e8] sm:$0xff] }
  0x4d   :  { %686 = vmatmul.mubr.bf16.gmra.mrb[4].mxu0 %v232_v20  ;;  %1448 = vmatpush1.bf16.msra.mxu1 %v502_v27  ;;  %v245_v59 = vpack.c.bf16 %v185_v48, %v179_v47  ;;  %v182_v4 = vmul.f32 %v2017_v26, %v60_v55  ;;  %v509_v5 = vpack.c.bf16 %v417_v57, %v415_v56  ;;  %v420_v20 = vld [vmem:[%s3101_s0 + $0x4d0] sm:$0xff]  ;;  %v74_v32 = vld [vmem:[%s3103_s2 + $0x1c0] sm:$0xff]  ;;  %v87_v43 = vld [vmem:[%s3103_s2 + $0x228] sm:$0xff] }
  0x4e   :  { %592 = vmatprep.mubr.bf16.mxu1 %v237_v28  ;;  %695 = vmatprep.mubr.bf16.mxu0 %v239_v33  ;;  %v178_v9 = vmul.f32 %v2026_v29, %v56_v60  ;;  %v184_v10 = vmul.f32 %v2026_v29, %v62_v61  ;;  %v189_v11 = vmul.f32 %v2008_v23, %v67_v62  ;;  %v424_v28 = vld [vmem:[%s3101_s0 + $0x4f0] sm:$0xff]  ;;  %v427_v46 = vld [vmem:[%s3101_s0 + $0x508] sm:$0xff]  ;;  %v429_v47 = vld [vmem:[%s3101_s0 + $0x518] sm:$0xff] }
  0x4f   :  { %751 = vmatpush1.bf16.msra.mxu0 %v502_v27  ;;  %1439 = vmatprep.subr.bf16.mxu1 %v505_v39  ;;  %v195_v14 = vmul.f32 %v2008_v23, %v73_v0  ;;  %v191_v15 = vmul.f32 %v2011_v24, %v69_v1  ;;  %v197_v16 = vmul.f32 %v2011_v24, %v75_v2  ;;  %v422_v27 = vld [vmem:[%s3101_s0 + $0x4e0] sm:$0xff]  ;;  %v428_v52 = vld [vmem:[%s3101_s0 + $0x510] sm:$0xff] }
  0x50   :  { %752 = vmatprep.subr.bf16.mxu0 %v505_v39  ;;  %v508_v22 = vpack.c.bf16 %v416_v7, %v414_v6  ;;  %v511_v33 = vpack.c.bf16 %v421_v13, %v419_v12  ;;  %v242_v35 = vpack.c.bf16 %v182_v4, %v2189_v3  ;;  %v244_v36 = vpack.c.bf16 %v184_v10, %v178_v9  ;;  %v85_v39 = vld [vmem:[%s3103_s2 + $0x218] sm:$0xff]  ;;  %v426_v51 = vld [vmem:[%s3101_s0 + $0x500] sm:$0xff]  ;;  %v40_v57 = vld [vmem:[%s3103_s2 + $0xb0] sm:$0xff] }
  0x51   :  { %1449 = vmatpush1.bf16.msra.mxu1 %v504_v40  ;;  %v510_v37 = vpack.c.bf16 %v420_v20, %v418_v18  ;;  %v249_v41 = vpack.c.bf16 %v195_v14, %v189_v11  ;;  %v251_v42 = vpack.c.bf16 %v197_v16, %v191_v15  ;;  %v513_v44 = vpack.c.bf16 %v425_v25, %v423_v21  ;;  %v78_v62 = vld [vmem:[%s3103_s2 + $0x1e0] sm:$0xff]  ;;  %v84_v0 = vld [vmem:[%s3103_s2 + $0x210] sm:$0xff]  ;;  %v91_v21 = vld [vmem:[%s3103_s2 + $0x248] sm:$0xff] }
  0x52   :  { %1440 = vmatprep.subr.bf16.mxu1 %v507_v49  ;;  %v512_v45 = vpack.c.bf16 %v424_v28, %v422_v27  ;;  %v2261_v48 = vmul.f32 %v2017_v26, %v66_v17  ;;  %v2267_v50 = vmul.f32 %v2026_v29, %v68_v31  ;;  %v2282_v55 = vmul.f32 %v2008_v23, %v79_v38  ;;  %v46_v7 = vld [vmem:[%s3103_s2 + $0xe0] sm:$0xff]  ;;  %v52_v9 = vld [vmem:[%s3103_s2 + $0x110] sm:$0xff]  ;;  %v433_v25 = vld [vmem:[%s3101_s0 + $0x538] sm:$0xff] }
  0x53   :  { %753 = vmatpush1.bf16.msra.mxu0 %v504_v40  ;;  %v81_v40 = vld [vmem:[%s3103_s2 + $0x1f8] sm:$0xff]  ;;  %v2285_v56 = vrot.slane %v1996_v19, %v128_v34  ;;  %v209_v61 = vmul.f32 %v2011_v24, %v87_v43  ;;  %v515_v1 = vpack.c.bf16 %v429_v47, %v427_v46  ;;  %v514_v2 = vpack.c.bf16 %v428_v52, %v426_v51  ;;  %v94_v10 = vld [vmem:[%s3103_s2 + $0x260] sm:$0xff]  ;;  %v80_v13 = vld [vmem:[%s3103_s2 + $0x1f0] sm:$0xff] }
  0x54   :  { %754 = vmatprep.subr.bf16.mxu0 %v507_v49  ;;  %593 = vmatmul.mubr.bf16.gmra.mrb[8].mxu1 %v236_v53  ;;  %v2264_v49 = vmul.f32 %v2017_v26, %v72_v30  ;;  %v34_v53 = vld [vmem:[%s3103_s2 + $0x80] sm:$0xff]  ;;  %v203_v60 = vmul.f32 %v2011_v24, %v81_v40  ;;  %v2328_v12 = vmul.f32 %v2017_v26, %v78_v62  ;;  %v100_v16 = vld [vmem:[%s3103_s2 + $0x290] sm:$0xff]  ;;  %v93_v38 = vld [vmem:[%s3103_s2 + $0x258] sm:$0xff]  ;;  %v132_v46 = vsub.s32 5, %v1972_v8 }
  0x55   :  { %696 = vmatmul.mubr.bf16.gmra.mrb[8].mxu0 %v238_v54  ;;  %602 = vmatprep.mubr.bf16.mxu1 %v243_v58  ;;  %v2279_v54 = vmul.f32 %v2026_v29, %v74_v32  ;;  %v82_v58 = vld [vmem:[%s3103_s2 + $0x200] sm:$0xff]  ;;  %v2306_v3 = vmul.f32 %v2285_v56, %v34_v53  ;;  %v206_v20 = vmul.f32 %v2017_v26, %v84_v0  ;;  %v64_v34 = vld [vmem:[%s3103_s2 + $0x170] sm:$0xff]  ;;  %v23_v62 = vld [vmem:[%s3103_s2 + $0x28] sm:$0xff] }
  0x56   :  { %705 = vmatprep.mubr.bf16.mxu0 %v245_v59  ;;  %1450 = vmatpush1.bf16.msra.mxu1 %v506_v63  ;;  %v207_v59 = vmul.f32 %v2008_v23, %v85_v39  ;;  %v248_v4 = vpack.c.bf16 %v2264_v49, %v2261_v48  ;;  %v2314_v6 = vmul.f32 %v2285_v56, %v82_v58  ;;  %v86_v14 = vld [vmem:[%s3103_s2 + $0x220] sm:$0xff]  ;;  %v99_v39 = vld [vmem:[%s3103_s2 + $0x288] sm:$0xff]  ;;  %v77_v0 = vld [vmem:[%s3103_s2 + $0x1d8] sm:$0xff] }
  0x57   :  { %755 = vmatpush1.bf16.msra.mxu0 %v506_v63  ;;  %1441 = vmatprep.subr.bf16.mxu1 %v509_v5  ;;  %v88_v63 = vld [vmem:[%s3103_s2 + $0x230] sm:$0xff]  ;;  %v250_v11 = vpack.c.bf16 %v2279_v54, %v2267_v50  ;;  %v257_v18 = vpack.c.bf16 %v209_v61, %v203_v60  ;;  %v2358_v30 = vmul.f32 %v2285_v56, %v46_v7  ;;  %v430_v43 = vld [vmem:[%s3101_s0 + $0x520] sm:$0xff] }
  0x58   :  { %756 = vmatprep.subr.bf16.mxu0 %v509_v5  ;;  %v2311_v5 = vmul.f32 %v2285_v56, %v40_v57  ;;  %v2337_v15 = vmul.f32 %v2285_v56, %v88_v63  ;;  %v255_v17 = vpack.c.bf16 %v207_v59, %v2282_v55  ;;  %v2361_v31 = vmul.f32 %v2285_v56, %v52_v9  ;;  %v90_v57 = vld [vmem:[%s3103_s2 + $0x240] sm:$0xff]  ;;  %v92_v60 = vld [vmem:[%s3103_s2 + $0x250] sm:$0xff]  ;;  %v71_v63 = vld [vmem:[%s3103_s2 + $0x1a8] sm:$0xff] }
  0x59   :  { %v2364_v32 = vmul.f32 %v2285_v56, %v94_v10  ;;  %v2384_v40 = vmul.f32 %v2285_v56, %v100_v16  ;;  %v2402_v49 = vmul.f32 %v2285_v56, %v64_v34  ;;  %v215_v51 = vmul.f32 %v2011_v24, %v93_v38  ;;  %v98_v61 = vld [vmem:[%s3103_s2 + $0x280] sm:$0xff] }
  0x5a   :  { %1451 = vmatpush1.bf16.msra.mxu1 %v508_v22  ;;  %v234_v27 = vpack.c.bf16 %v2311_v5, %v2306_v3  ;;  %v258_v28 = vpack.c.bf16 %v2337_v15, %v2314_v6  ;;  %v221_v52 = vmul.f32 %v2011_v24, %v99_v39  ;;  %v254_v54 = vpack.c.bf16 %v206_v20, %v2328_v12  ;;  %v70_v20 = vld [vmem:[%s3103_s2 + $0x1a0] sm:$0xff] }
  0x5b   :  { %757 = vmatpush1.bf16.msra.mxu0 %v508_v22  ;;  %1442 = vmatprep.subr.bf16.mxu1 %v511_v33  ;;  %v431_v22 = vld [vmem:[%s3101_s0 + $0x528] sm:$0xff]  ;;  %v264_v47 = vpack.c.bf16 %v2384_v40, %v2364_v32  ;;  %v2417_v24 = vrot.slane %v1996_v19, %v132_v46  ;;  %v29_v19 = vld [vmem:[%s3103_s2 + $0x58] sm:$0xff]  ;;  %v220_v7 = vmul.f32 %v2026_v29, %v98_v61 }
  0x5c   :  { %758 = vmatprep.subr.bf16.mxu0 %v511_v33  ;;  %603 = vmatmul.mubr.bf16.gmra.mrb[12].mxu1 %v242_v35  ;;  %v58_v33 = vld [vmem:[%s3103_s2 + $0x140] sm:$0xff]  ;;  %v202_v35 = vmul.f32 %v2026_v29, %v80_v13  ;;  %v263_v59 = vpack.c.bf16 %v221_v52, %v215_v51  ;;  %v47_v51 = vld [vmem:[%s3103_s2 + $0xe8] sm:$0xff]  ;;  %v65_v61 = vld [vmem:[%s3103_s2 + $0x178] sm:$0xff] }
  0x5d   :  { %706 = vmatmul.mubr.bf16.gmra.mrb[12].mxu0 %v244_v36  ;;  %612 = vmatprep.mubr.bf16.mxu1 %v249_v41  ;;  %v208_v36 = vmul.f32 %v2026_v29, %v86_v14  ;;  %v213_v41 = vmul.f32 %v2008_v23, %v91_v21  ;;  %v2399_v48 = vmul.f32 %v2285_v56, %v58_v33  ;;  %v76_v21 = vld [vmem:[%s3103_s2 + $0x1d0] sm:$0xff]  ;;  %v89_v33 = vld [vmem:[%s3103_s2 + $0x238] sm:$0xff]  ;;  %v95_v52 = vld [vmem:[%s3103_s2 + $0x268] sm:$0xff] }
  0x5e   :  { %715 = vmatprep.mubr.bf16.mxu0 %v251_v42  ;;  %1452 = vmatpush1.bf16.msra.mxu1 %v510_v37  ;;  %v517_v42 = vpack.c.bf16 %v433_v25, %v431_v22  ;;  %v145_v9 = vmul.f32 %v2417_v24, %v23_v62  ;;  %v151_v10 = vmul.f32 %v2417_v24, %v29_v19  ;;  %v41_v22 = vld [vmem:[%s3103_s2 + $0xb8] sm:$0xff]  ;;  %v83_v25 = vld [vmem:[%s3103_s2 + $0x208] sm:$0xff] }
  0x5f   :  { %759 = vmatpush1.bf16.msra.mxu0 %v510_v37  ;;  %1443 = vmatprep.subr.bf16.mxu1 %v513_v44  ;;  %v97_v37 = vld [vmem:[%s3103_s2 + $0x278] sm:$0xff]  ;;  %v246_v53 = vpack.c.bf16 %v2402_v49, %v2399_v48  ;;  %v256_v55 = vpack.c.bf16 %v208_v36, %v202_v35  ;;  %v199_v12 = vmul.f32 %v2417_v24, %v77_v0 }
  0x60   :  { %760 = vmatprep.subr.bf16.mxu0 %v513_v44  ;;  %v432_v44 = vld [vmem:[%s3101_s0 + $0x530] sm:$0xff]  ;;  %v219_v50 = vmul.f32 %v2008_v23, %v97_v37  ;;  %v229_v16 = vpack.c.bf16 %v151_v10, %v145_v9  ;;  %v192_v37 = vmul.f32 %v2285_v56, %v70_v20  ;;  %v198_v38 = vmul.f32 %v2285_v56, %v76_v21 }
  0x61   :  { %v516_v8 = vpack.c.bf16 %v432_v44, %v430_v43  ;;  %v96_v23 = vld [vmem:[%s3103_s2 + $0x270] sm:$0xff]  ;;  %v163_v39 = vmul.f32 %v2417_v24, %v41_v22  ;;  %v187_v19 = vmul.f32 %v2417_v24, %v65_v61 }
  0x62   :  { %1453 = vmatpush1.bf16.msra.mxu1 %v512_v45  ;;  %v261_v58 = vpack.c.bf16 %v219_v50, %v213_v41  ;;  %v205_v41 = vmul.f32 %v2417_v24, %v83_v25  ;;  %v252_v44 = vpack.c.bf16 %v198_v38, %v192_v37 }
  0x63   :  { %761 = vmatpush1.bf16.msra.mxu0 %v512_v45  ;;  %1444 = vmatprep.subr.bf16.mxu1 %v515_v1  ;;  %v240_v45 = vpack.c.bf16 %v2361_v31, %v2358_v30 }
  0x64   :  { %762 = vmatprep.subr.bf16.mxu0 %v515_v1  ;;  %613 = vmatmul.mubr.bf16.gmra.mrb[16].mxu1 %v248_v4  ;;  %v212_v1 = vmul.f32 %v2017_v26, %v90_v57  ;;  %v214_v4 = vmul.f32 %v2026_v29, %v92_v60  ;;  %v35_v29 = vld [vmem:[%s3103_s2 + $0x88] sm:$0xff]  ;;  %v217_v57 = vmul.f32 %v2417_v24, %v95_v52 }
  0x65   :  { %716 = vmatmul.mubr.bf16.gmra.mrb[16].mxu0 %v250_v11  ;;  %622 = vmatprep.mubr.bf16.mxu1 %v255_v17  ;;  %v193_v11 = vmul.f32 %v2417_v24, %v71_v63  ;;  %v157_v35 = vmul.f32 %v2417_v24, %v35_v29  ;;  %v59_v60 = vld [vmem:[%s3103_s2 + $0x148] sm:$0xff] }
  0x66   :  { %725 = vmatprep.mubr.bf16.mxu0 %v257_v18  ;;  %1454 = vmatpush1.bf16.msra.mxu1 %v514_v2  ;;  %v262_v14 = vpack.c.bf16 %v220_v7, %v214_v4  ;;  %v28_v18 = vld [vmem:[%s3103_s2 + $0x50] sm:$0xff]  ;;  %v181_v62 = vmul.f32 %v2417_v24, %v59_v60 }
  0x67   :  { %763 = vmatpush1.bf16.msra.mxu0 %v514_v2  ;;  %1445 = vmatprep.subr.bf16.mxu1 %v517_v42  ;;  %v218_v2 = vmul.f32 %v2017_v26, %v96_v23  ;;  %v22_v26 = vld [vmem:[%s3103_s2 + $0x20] sm:$0xff]  ;;  %v253_v17 = vpack.c.bf16 %v199_v12, %v193_v11  ;;  %v150_v36 = vmul.f32 %v2285_v56, %v28_v18 }
  0x68   :  { %764 = vmatprep.subr.bf16.mxu0 %v517_v42  ;;  %v144_v34 = vmul.f32 %v2285_v56, %v22_v26  ;;  %v211_v42 = vmul.f32 %v2417_v24, %v89_v33  ;;  %v235_v46 = vpack.c.bf16 %v163_v39, %v157_v35  ;;  %v53_v56 = vld [vmem:[%s3103_s2 + $0x118] sm:$0xff]  ;;  %v247_v63 = vpack.c.bf16 %v187_v19, %v181_v62 }
  0x69   :  { %v260_v13 = vpack.c.bf16 %v218_v2, %v212_v1 }
  0x6a   :  { %1455 = vmatpush1.bf16.msra.mxu1 %v516_v8  ;;  %v228_v43 = vpack.c.bf16 %v150_v36, %v144_v34  ;;  %v259_v50 = vpack.c.bf16 %v211_v42, %v205_v41 }
  0x6b   :  { %765 = vmatpush1.bf16.msra.mxu0 %v516_v8  ;;  %v101_v8 = vld [vmem:[%s3103_s2 + $0x298] sm:$0xff] }
  0x6c   :  { %623 = vmatmul.mubr.bf16.gmra.mrb[20].mxu1 %v254_v54  ;;  %v169_v54 = vmul.f32 %v2417_v24, %v47_v51  ;;  %v223_v23 = vmul.f32 %v2417_v24, %v101_v8 }
  0x6d   :  { %726 = vmatmul.mubr.bf16.gmra.mrb[20].mxu0 %v256_v55  ;;  %632 = vmatprep.mubr.bf16.mxu1 %v261_v58  ;;  %v175_v55 = vmul.f32 %v2417_v24, %v53_v56 }
  0x6e   :  { %735 = vmatprep.mubr.bf16.mxu0 %v263_v59  ;;  %v265_v59 = vpack.c.bf16 %v223_v23, %v217_v57 }
  0x6f   :  { %v241_v58 = vpack.c.bf16 %v175_v55, %v169_v54 }
  0x74   :  { %633 = vmatmul.mubr.bf16.gmra.mrb[24].mxu1 %v260_v13 }
  0x75   :  { %736 = vmatmul.mubr.bf16.gmra.mrb[24].mxu0 %v262_v14  ;;  %1433 = vmatprep.mubr.msk.bf16.mxu1 %vm518_vm0, %v253_v17 }
  0x76   :  { %1429 = vmatprep.mubr.msk.bf16.mxu0 %vm518_vm0, %v229_v16 }
  0x7c   :  { %819 = vmatmul.mubr.bf16.vlgmr.msra.gmra.mrb[28].mxu1 %v252_v44 }
  0x7d   :  { %779 = vmatmul.mubr.bf16.vlgmr.msra.gmra.mrb[0].mxu0 %v228_v43  ;;  %1434 = vmatprep.mubr.msk.bf16.mxu1 %vm518_vm0, %v259_v50 }
  0x7e   :  { %1430 = vmatprep.mubr.msk.bf16.mxu0 %vm518_vm0, %v235_v46 }
  0x84   :  { %829 = vmatmul.mubr.bf16.gmra.mrb[32].mxu1 %v258_v28 }
  0x85   :  { %789 = vmatmul.mubr.bf16.gmra.mrb[4].mxu0 %v234_v27  ;;  %1435 = vmatprep.mubr.msk.bf16.mxu1 %vm518_vm0, %v265_v59 }
  0x86   :  { %1431 = vmatprep.mubr.msk.bf16.mxu0 %vm518_vm0, %v241_v58 }
  0x8c   :  { %839 = vmatmul.mubr.bf16.gmra.mrb[36].mxu1 %v264_v47 }
  0x8d   :  { %799 = vmatmul.mubr.bf16.gmra.mrb[8].mxu0 %v240_v45 }
  0x8e   :  { %1432 = vmatprep.mubr.msk.bf16.mxu0 %vm518_vm0, %v247_v63 }
  0x95   :  { %809 = vmatmul.mubr.bf16.gmra.mrb[12].mxu0 %v246_v53 }
 0x117   :  { %v574_v3 = vpop.f32.mrb[0].mxu1 }
 0x118   :  { %v576_v5 = vpop.f32.mrb[1].mxu1 }
 0x119   :  { %v578_v6 = vpop.f32.mrb[2].mxu1 }
 0x11a   :  { %v2523_v15 = vpop.f32.mrb[3].mxu1 }
 0x11f   :  { %v2525_v27 = vpop.f32.mrb[4].mxu1 }
 0x120   :  { %v2527_v28 = vpop.f32.mrb[5].mxu1 }
 0x121   :  { %v2529_v30 = vpop.f32.mrb[6].mxu1 }
 0x122   :  { %v2531_v31 = vpop.f32.mrb[7].mxu1 }
 0x127   :  { %v2533_v32 = vpop.f32.mrb[8].mxu1 }
 0x128   :  { %v2535_v40 = vpop.f32.mrb[9].mxu1 }
 0x129   :  { %v2537_v45 = vpop.f32.mrb[10].mxu1 }
 0x12a   :  { %v2539_v47 = vpop.f32.mrb[11].mxu1 }
 0x12f   :  { %v2541_v48 = vpop.f32.mrb[12].mxu1 }
 0x130   :  { %v2543_v49 = vpop.f32.mrb[13].mxu1 }
 0x131   :  { %v2545_v53 = vpop.f32.mrb[14].mxu1 }
 0x132   :  { %v2547_v24 = vpop.f32.mrb[15].mxu1 }
 0x137   :  { %v614_v0 = vpop.f32.mrb[16].mxu1 }
 0x138   :  { %v717_v1 = vpop.f32.mrb[16].mxu0  ;;  %v616_v4 = vpop.f32.mrb[17].mxu1 }
 0x139   :  { %v718_v2 = vadd.f32 %v717_v1, %v614_v0  ;;  %v719_v7 = vpop.f32.mrb[17].mxu0  ;;  %v618_v10 = vpop.f32.mrb[18].mxu1 }
 0x13a   :  { %v720_v9 = vadd.f32 %v719_v7, %v616_v4  ;;  %v721_v11 = vpop.f32.mrb[18].mxu0  ;;  %v620_v13 = vpop.f32.mrb[19].mxu1 }
 0x13b   :  { %v722_v12 = vadd.f32 %v721_v11, %v618_v10  ;;  %v723_v14 = vpop.f32.mrb[19].mxu0 }
 0x13c   :  { %v724_v26 = vadd.f32 %v723_v14, %v620_v13 }
 0x13f   :  { %v624_v29 = vpop.f32.mrb[20].mxu1 }
 0x140   :  { %v727_v16 = vpop.f32.mrb[20].mxu0  ;;  %v626_v18 = vpop.f32.mrb[21].mxu1 }
 0x141   :  { %v728_v17 = vadd.f32 %v727_v16, %v624_v29  ;;  %v729_v20 = vpop.f32.mrb[21].mxu0  ;;  %v628_v22 = vpop.f32.mrb[22].mxu1 }
 0x142   :  { %v730_v21 = vadd.f32 %v729_v20, %v626_v18  ;;  %v731_v25 = vpop.f32.mrb[22].mxu0  ;;  %v630_v34 = vpop.f32.mrb[23].mxu1 }
 0x143   :  { %v732_v33 = vadd.f32 %v731_v25, %v628_v22  ;;  %v733_v35 = vpop.f32.mrb[23].mxu0 }
 0x144   :  { %v734_v36 = vadd.f32 %v733_v35, %v630_v34 }
 0x147   :  { %v634_v37 = vpop.f32.mrb[24].mxu1 }
 0x148   :  { %v737_v38 = vpop.f32.mrb[24].mxu0  ;;  %v636_v41 = vpop.f32.mrb[25].mxu1 }
 0x149   :  { %v2549_v39 = vadd.f32 %v737_v38, %v634_v37  ;;  %v739_v42 = vpop.f32.mrb[25].mxu0  ;;  %v638_v44 = vpop.f32.mrb[26].mxu1 }
 0x14a   :  { %v2551_v43 = vadd.f32 %v739_v42, %v636_v41  ;;  %v741_v46 = vpop.f32.mrb[26].mxu0  ;;  %v640_v51 = vpop.f32.mrb[27].mxu1 }
 0x14b   :  { %v2553_v50 = vadd.f32 %v741_v46, %v638_v44  ;;  %v743_v56 = vpop.f32.mrb[27].mxu0 }
 0x14c   :  { %v2555_v52 = vadd.f32 %v743_v56, %v640_v51 }
 0x14f   :  { %v820_v54 = vpop.f32.mrb[28].mxu1 }
 0x150   :  { %v780_v8 = vpop.f32.mrb[0].mxu0  ;;  %v2559_v57 = vadd.f32 %v820_v54, %v718_v2  ;;  %v822_v58 = vpop.f32.mrb[29].mxu1 }
 0x151   :  { %v2557_v55 = vadd.f32 %v780_v8, %v574_v3  ;;  %v782_v23 = vpop.f32.mrb[1].mxu0  ;;  %v2563_v60 = vadd.f32 %v822_v58, %v720_v9  ;;  %v824_v62 = vpop.f32.mrb[30].mxu1 }
 0x152   :  { %v2561_v59 = vadd.f32 %v782_v23, %v576_v5  ;;  %v784_v61 = vpop.f32.mrb[2].mxu0  ;;  %v2567_v63 = vadd.f32 %v824_v62, %v722_v12  ;;  %v826_v1 = vpop.f32.mrb[31].mxu1 }
 0x153   :  { %v2565_v19 = vadd.f32 %v784_v61, %v578_v6  ;;  %v786_v0 = vpop.f32.mrb[3].mxu0  ;;  %v2572_v2 = vadd.f32 %v826_v1, %v724_v26  ;;  %v882_v6 = vsel %vm849_vm1, %v2563_v60, 0.0  ;;  %v923_v56 = vmul.f32 %v2563_v60, %v2563_v60 }
 0x154   :  { %v2570_v3 = vadd.f32 %v786_v0, %v2523_v15  ;;  %v850_v4 = vsel %vm849_vm1, %v2561_v59, 0.0  ;;  %v883_v18 = vadd.f32 %v882_v6, %v2559_v57 }
 0x155   :  { %v851_v5 = vadd.f32 %v2557_v55, %v850_v4  ;;  %v886_v7 = vsel %vm849_vm1, %v2572_v2, 0.0  ;;  %v925_v13 = vmul.f32 %v2572_v2, %v2572_v2  ;;  %v908_v20 = vmul.f32 %v2565_v19, %v2565_v19 }
 0x156   :  { %v909_v9 = vmul.f32 %v2570_v3, %v2570_v3  ;;  %v887_v15 = vadd.f32 %v886_v7, %v2567_v63 }
 0x157   :  { %852 = vadd.xlane.f32.xlu0 %v851_v5  ;;  %v830_v11 = vpop.f32.mrb[32].mxu1  ;;  %v970_v46 = vsel %vm849_vm1, %v925_v13, 0.0 }
 0x158   :  { %v790_v10 = vpop.f32.mrb[4].mxu0  ;;  %v938_v12 = vsel %vm849_vm1, %v909_v9, 0.0  ;;  %v2590_v26 = vadd.f32 %v830_v11, %v728_v17  ;;  %v832_v16 = vpop.f32.mrb[33].mxu1  ;;  %888 = vadd.xlane.f32.xlu1 %v887_v15  ;;  %v907_v17 = vmul.f32 %v2561_v59, %v2561_v59  ;;  %v966_v9 = vsel %vm849_vm1, %v923_v56, 0.0 }
 0x159   :  { %v2588_v14 = vadd.f32 %v790_v10, %v2525_v27  ;;  %v792_v29 = vpop.f32.mrb[5].mxu0  ;;  %v2598_v25 = vadd.f32 %v832_v16, %v730_v21  ;;  %v834_v35 = vpop.f32.mrb[34].mxu1  ;;  %v854_v27 = vsel %vm849_vm1, %v2570_v3, 0.0 }
 0x15a   :  { %v2596_v22 = vadd.f32 %v792_v29, %v2527_v28  ;;  %v794_v34 = vpop.f32.mrb[6].mxu0  ;;  %v2607_v38 = vadd.f32 %v834_v35, %v732_v33  ;;  %v836_v42 = vpop.f32.mrb[35].mxu1  ;;  %v939_v28 = vadd.f32 %v938_v12, %v908_v20  ;;  %v855_v51 = vadd.f32 %v2565_v19, %v854_v27 }
 0x15b   :  { %v2605_v37 = vadd.f32 %v794_v34, %v2529_v30  ;;  %v796_v41 = vpop.f32.mrb[7].mxu0  ;;  %884 = vadd.xlane.f32.xlu0 %v883_v18  ;;  %v2612_v44 = vadd.f32 %v836_v42, %v734_v36  ;;  %v924_v30 = vmul.f32 %v2567_v63, %v2567_v63  ;;  %v934_v33 = vsel %vm849_vm1, %v907_v17, 0.0 }
 0x15c   :  { %v2610_v21 = vadd.f32 %v796_v41, %v2531_v31  ;;  %940 = vadd.xlane.f32.xlu1 %v939_v28  ;;  %v906_v31 = vmul.f32 %v2557_v55, %v2557_v55  ;;  %v858_v23 = vsel %vm849_vm1, %v2596_v22, 0.0  ;;  %v890_v13 = vsel %vm849_vm1, %v2598_v25, 0.0 }
 0x15d   :  { %v971_v8 = vadd.f32 %v970_v46, %v924_v30  ;;  %v859_v11 = vadd.f32 %v2588_v14, %v858_v23  ;;  %v911_v29 = vmul.f32 %v2596_v22, %v2596_v22  ;;  %v891_v35 = vadd.f32 %v890_v13, %v2590_v26 }
 0x15e   :  { %v935_v1 = vadd.f32 %v934_v33, %v906_v31  ;;  %v927_v42 = vmul.f32 %v2598_v25, %v2598_v25  ;;  %v929_v33 = vmul.f32 %v2612_v44, %v2612_v44  ;;  %v928_v23 = vmul.f32 %v2607_v38, %v2607_v38 }
 0x15f   :  { %856 = vadd.xlane.f32.xlu0 %v855_v51  ;;  %v840_v54 = vpop.f32.mrb[36].mxu1  ;;  %v942_v41 = vsel %vm849_vm1, %v911_v29, 0.0  ;;  %v910_v51 = vmul.f32 %v2588_v14, %v2588_v14 }
 0x160   :  { %v800_v36 = vpop.f32.mrb[8].mxu0  ;;  %v2629_v61 = vadd.f32 %v840_v54, %v2549_v39  ;;  %v842_v0 = vpop.f32.mrb[37].mxu1  ;;  %972 = vadd.xlane.f32.xlu1 %v971_v8  ;;  %v974_v8 = vsel %vm849_vm1, %v927_v42, 0.0 }
 0x161   :  { %v2626_v58 = vadd.f32 %v800_v36, %v2533_v32  ;;  %v802_v62 = vpop.f32.mrb[9].mxu0  ;;  %v2635_v5 = vadd.f32 %v842_v0, %v2551_v43  ;;  %v844_v6 = vpop.f32.mrb[38].mxu1  ;;  %v943_v56 = vadd.f32 %v942_v41, %v910_v51  ;;  %v926_v36 = vmul.f32 %v2590_v26, %v2590_v26 }
 0x162   :  { %v2632_v4 = vadd.f32 %v802_v62, %v2535_v40  ;;  %v804_v7 = vpop.f32.mrb[10].mxu0  ;;  %v2642_v39 = vadd.f32 %v844_v6, %v2553_v50  ;;  %v846_v10 = vpop.f32.mrb[39].mxu1  ;;  %v922_v40 = vmul.f32 %v2559_v57, %v2559_v57 }
 0x163   :  { %3111 = vst [vmem:[#allocation2_spill] sm:$0xff] %v2635_v5  ;;  %v2639_v32 = vadd.f32 %v804_v7, %v2537_v45  ;;  %v806_v15 = vpop.f32.mrb[11].mxu0  ;;  %936 = vadd.xlane.f32.xlu0 %v935_v1  ;;  %v2651_v12 = vadd.f32 %v846_v10, %v2555_v52  ;;  %v862_v45 = vsel %vm849_vm1, %v2610_v21, 0.0  ;;  %v913_v52 = vmul.f32 %v2610_v21, %v2610_v21 }
 0x164   :  { %3112 = vst [vmem:[#allocation3_spill] sm:$0xff] %v2642_v39  ;;  %v2648_v43 = vadd.f32 %v806_v15, %v2539_v47  ;;  %860 = vadd.xlane.f32.xlu1 %v859_v11  ;;  %v967_v50 = vadd.f32 %v966_v9, %v922_v40  ;;  %v863_v16 = vadd.f32 %v2605_v37, %v862_v45  ;;  %v894_v47 = vsel %vm849_vm1, %v2612_v44, 0.0 }
 0x165   :  { %3113 = vst [vmem:[#allocation4_spill] sm:$0xff] %v2651_v12  ;;  %v975_v54 = vadd.f32 %v974_v8, %v926_v36  ;;  %v866_v62 = vsel %vm849_vm1, %v2632_v4, 0.0  ;;  %v898_v6 = vsel %vm849_vm1, %v2635_v5, 0.0  ;;  %v915_v9 = vmul.f32 %v2632_v4, %v2632_v4 }
 0x166   :  { %v870_v1 = vsel %vm849_vm1, %v2648_v43, 0.0  ;;  %v867_v7 = vadd.f32 %v2626_v58, %v866_v62  ;;  %v902_v10 = vsel %vm849_vm1, %v2651_v12, 0.0  ;;  %v917_v11 = vmul.f32 %v2648_v43, %v2648_v43 }
 0x167   :  { %968 = vadd.xlane.f32.xlu0 %v967_v50  ;;  %v871_v15 = vadd.f32 %v2639_v32, %v870_v1  ;;  %v899_v40 = vadd.f32 %v898_v6, %v2629_v61  ;;  %v950_v45 = vsel %vm849_vm1, %v915_v9, 0.0  ;;  %v903_v50 = vadd.f32 %v902_v10, %v2642_v39 }
 0x168   :  { %v810_v18 = vpop.f32.mrb[12].mxu0  ;;  %864 = vadd.xlane.f32.xlu1 %v863_v16  ;;  %v914_v13 = vmul.f32 %v2626_v58, %v2626_v58  ;;  %v954_v29 = vsel %vm849_vm1, %v917_v11, 0.0  ;;  %v930_v36 = vmul.f32 %v2629_v61, %v2629_v61 }
 0x169   :  { %v2665_v20 = vadd.f32 %v810_v18, %v2541_v48  ;;  %v812_v34 = vpop.f32.mrb[13].mxu0  ;;  %v895_v48 = vadd.f32 %v894_v47, %v2607_v38  ;;  %v916_v18 = vmul.f32 %v2639_v32, %v2639_v32 }
 0x16a   :  { %v2669_v27 = vadd.f32 %v812_v34, %v2543_v49  ;;  %v814_v17 = vpop.f32.mrb[14].mxu0  ;;  %v946_v49 = vsel %vm849_vm1, %v913_v52, 0.0  ;;  %v951_v16 = vadd.f32 %v950_v45, %v914_v13 }
 0x16b   :  { %v2675_v28 = vadd.f32 %v814_v17, %v2545_v53  ;;  %v816_v46 = vpop.f32.mrb[15].mxu0  ;;  %892 = vadd.xlane.f32.xlu0 %v891_v35  ;;  %v912_v53 = vmul.f32 %v2605_v37, %v2605_v37  ;;  %v955_v34 = vadd.f32 %v954_v29, %v916_v18  ;;  %v918_v51 = vmul.f32 %v2665_v20, %v2665_v20 }
 0x16c   :  { %v2681_v30 = vadd.f32 %v816_v46, %v2547_v24  ;;  %896 = vadd.xlane.f32.xlu1 %v895_v48  ;;  %v978_v24 = vsel %vm849_vm1, %v929_v33, 0.0  ;;  %v874_v47 = vsel %vm849_vm1, %v2669_v27, 0.0  ;;  %v919_v52 = vmul.f32 %v2669_v27, %v2669_v27 }
 0x16d   :  { %3114 = vst [vmem:[#allocation5_spill] sm:$0xff] %v2675_v28  ;;  %v947_v31 = vadd.f32 %v946_v49, %v912_v53  ;;  %v979_v0 = vadd.f32 %v978_v24, %v928_v23  ;;  %v875_v41 = vadd.f32 %v2665_v20, %v874_v47  ;;  %v931_v46 = vmul.f32 %v2635_v5, %v2635_v5 }
 0x16e   :  { %3115 = vst [vmem:[#allocation6_spill] sm:$0xff] %v2681_v30  ;;  %v878_v35 = vsel %vm849_vm1, %v2681_v30, 0.0  ;;  %v921_v17 = vmul.f32 %v2681_v30, %v2681_v30  ;;  %v958_v42 = vsel %vm849_vm1, %v919_v52, 0.0  ;;  %v933_v33 = vmul.f32 %v2651_v12, %v2651_v12 }
 0x16f   :  { %944 = vadd.xlane.f32.xlu0 %v943_v56  ;;  %v879_v48 = vadd.f32 %v2675_v28, %v878_v35  ;;  %v959_v56 = vadd.f32 %v958_v42, %v918_v51  ;;  %v920_v53 = vmul.f32 %v2675_v28, %v2675_v28  ;;  %v982_v8 = vsel %vm849_vm1, %v931_v46, 0.0 }
 0x170   :  { %948 = vadd.xlane.f32.xlu1 %v947_v31  ;;  %v962_v49 = vsel %vm849_vm1, %v921_v17, 0.0  ;;  %v986_v24 = vsel %vm849_vm1, %v933_v33, 0.0  ;;  %v932_v23 = vmul.f32 %v2642_v39, %v2642_v39 }
 0x171   :  { %v963_v31 = vadd.f32 %v962_v49, %v920_v53 }
 0x172   :  { %v987_v62 = vadd.f32 %v986_v24, %v932_v23 }
 0x173   :  { %976 = vadd.xlane.f32.xlu0 %v975_v54  ;;  %v983_v54 = vadd.f32 %v982_v8, %v930_v36 }
 0x174   :  { %980 = vadd.xlane.f32.xlu1 %v979_v0  ;;  %v1551_v0 = vmov 0  }
 0x175   :  { %1515 = vset.pattern.permute.xlu0 %v1551_v0  ;;  %1516 = vset.pattern.permute.xlu1 %v1551_v0 }
 0x177   :  { %868 = vadd.xlane.f32.xlu0 %v867_v7 }
 0x178   :  { %872 = vadd.xlane.f32.xlu1 %v871_v15 }
 0x17b   :  { %900 = vadd.xlane.f32.xlu0 %v899_v40 }
 0x17c   :  { %904 = vadd.xlane.f32.xlu1 %v903_v50 }
 0x17f   :  { %952 = vadd.xlane.f32.xlu0 %v951_v16 }
 0x180   :  { %956 = vadd.xlane.f32.xlu1 %v955_v34 }
 0x183   :  { %876 = vadd.xlane.f32.xlu0 %v875_v41 }
 0x184   :  { %880 = vadd.xlane.f32.xlu1 %v879_v48 }
 0x187   :  { %960 = vadd.xlane.f32.xlu0 %v959_v56 }
 0x188   :  { %964 = vadd.xlane.f32.xlu1 %v963_v31 }
 0x18b   :  { %984 = vadd.xlane.f32.xlu0 %v983_v54 }
 0x18c   :  { %988 = vadd.xlane.f32.xlu1 %v987_v62 }
 0x1e4   :  { %v853_v1 = vpop.xlane.xlu0 %852 }
 0x1e5   :  { %v889_v7 = vpop.xlane.xlu1 %888  ;;  %v2744_v11 = vmul.f32 0.0051020407, %v853_v1 }
 0x1e6   :  { %v2742_v15 = vmul.f32 0.0051020407, %v889_v7 }
 0x1e7   :  { %v1018_v47 = vmul.f32 %v2744_v11, %v2744_v11 }
 0x1e8   :  { %v885_v6 = vpop.xlane.xlu0 %884  ;;  %v1027_v50 = vmul.f32 %v2742_v15, %v2742_v15 }
 0x1e9   :  { %v941_v9 = vpop.xlane.xlu1 %940  ;;  %v2754_v17 = vmul.f32 0.0051020407, %v885_v6 }
 0x1ea   :  { %v1005_v13 = vmul.f32 0.0051020407, %v941_v9 }
 0x1eb   :  { %v1026_v53 = vmul.f32 %v2754_v17, %v2754_v17 }
 0x1ec   :  { %v857_v10 = vpop.xlane.xlu0 %856 }
 0x1ed   :  { %v2746_v40 = vmul.f32 0.0051020407, %v857_v10  ;;  %v973_v45 = vpop.xlane.xlu1 %972 }
 0x1ee   :  { %v1013_v16 = vmul.f32 0.0051020407, %v973_v45 }
 0x1ef   :  { %v1019_v29 = vmul.f32 %v2746_v40, %v2746_v40 }
 0x1f0   :  { %v937_v18 = vpop.xlane.xlu0 %936  ;;  %v1041_v34 = vsub.f32 %v1013_v16, %v1027_v50 }
 0x1f1   :  { %v1033_v52 = vsub.f32 %v1005_v13, %v1019_v29  ;;  %v1004_v35 = vmul.f32 0.0051020407, %v937_v18  ;;  %v861_v41 = vpop.xlane.xlu1 %860  ;;  %v2771_v29 = vld [vmem:[%s3104_s3 + $0x8] sm:$0xff] }
 0x1f2   :  { %v1055_v46 = vmax.f32 %v1041_v34, 0.0  ;;  %v2758_v23 = vmul.f32 0.0051020407, %v861_v41 }
 0x1f3   :  { %v1047_v42 = vmax.f32 %v1033_v52, 0.0  ;;  %v1032_v48 = vsub.f32 %v1004_v35, %v1018_v47 }
 0x1f4   :  { %v969_v51 = vpop.xlane.xlu0 %968  ;;  %v1083_v33 = vadd.f32 1e-05, %v1055_v46  ;;  %v1020_v9 = vmul.f32 %v2758_v23, %v2758_v23 }
 0x1f5   :  { %v1075_v49 = vadd.f32 1e-05, %v1047_v42  ;;  %v1046_v56 = vmax.f32 %v1032_v48, 0.0  ;;  %v1012_v8 = vmul.f32 0.0051020407, %v969_v51  ;;  %v865_v31 = vpop.xlane.xlu1 %864  ;;  %v2780_v48 = vld [vmem:[%s3104_s3] sm:$0xff] }
 0x1f6   :  { %v2760_v1 = vmul.f32 0.0051020407, %v865_v31  ;;  %v2785_v51 = vld [vmem:[%s3104_s3 + $0x48] sm:$0xff] }
 0x1f7   :  { %1523 = vrsqrt.f32 %v1075_v49  ;;  %v1074_v36 = vadd.f32 1e-05, %v1046_v56  ;;  %v1040_v24 = vsub.f32 %v1012_v8, %v1026_v53 }
 0x1f8   :  { %1525 = vrsqrt.f32 %v1083_v33  ;;  %v893_v54 = vpop.xlane.xlu0 %892  ;;  %v1021_v16 = vmul.f32 %v2760_v1, %v2760_v1 }
 0x1f9   :  { %1527 = vrsqrt.f32 %v1074_v36  ;;  %v1054_v62 = vmax.f32 %v1040_v24, 0.0  ;;  %v897_v0 = vpop.xlane.xlu1 %896  ;;  %v2764_v10 = vmul.f32 0.0051020407, %v893_v54 }
 0x1fa   :  { %v2766_v50 = vmul.f32 0.0051020407, %v897_v0 }
 0x1fb   :  { %v1082_v7 = vadd.f32 1e-05, %v1054_v62  ;;  %v1028_v35 = vmul.f32 %v2764_v10, %v2764_v10 }
 0x1fc   :  { %v945_v6 = vpop.xlane.xlu0 %944  ;;  %v1029_v56 = vmul.f32 %v2766_v50, %v2766_v50 }
 0x1fd   :  { %v1006_v45 = vmul.f32 0.0051020407, %v945_v6  ;;  %1529 = vrsqrt.f32 %v1082_v7  ;;  %v949_v13 = vpop.xlane.xlu1 %948 }
 0x1fe   :  { %v1007_v47 = vmul.f32 0.0051020407, %v949_v13 }
 0x1ff   :  { %v1034_v18 = vsub.f32 %v1006_v45, %v1020_v9 }
 0x200   :  { %v977_v52 = vpop.xlane.xlu0 %976  ;;  %v1035_v42 = vsub.f32 %v1007_v47, %v1021_v16 }
 0x201   :  { %v1524_v34 = vpop.eup %1523  ;;  %v1048_v41 = vmax.f32 %v1034_v18, 0.0  ;;  %v1014_v46 = vmul.f32 0.0051020407, %v977_v52  ;;  %v981_v53 = vpop.xlane.xlu1 %980  ;;  %v2806_v52 = vld [vmem:[%s3104_s3 + $0x40] sm:$0xff] }
 0x202   :  { %v1526_v49 = vpop.eup %1525  ;;  %v2788_v33 = vmul.f32 %v1524_v34, %v2771_v29  ;;  %v1049_v36 = vmax.f32 %v1035_v42, 0.0  ;;  %v1015_v54 = vmul.f32 0.0051020407, %v981_v53 }
 0x203   :  { %v1528_v8 = vpop.eup %1527  ;;  %v1076_v31 = vadd.f32 1e-05, %v1048_v41  ;;  %v1042_v24 = vsub.f32 %v1014_v46, %v1028_v35  ;;  %v2798_v6 = vmul.f32 %v1526_v49, %v2785_v51 }
 0x204   :  { %v1117_v62 = vmul.f32 %v2788_v33, %v2746_v40  ;;  %v869_v0 = vpop.xlane.xlu0 %868  ;;  %v2795_v7 = vmul.f32 %v1528_v8, %v2780_v48  ;;  %v1077_v9 = vadd.f32 1e-05, %v1049_v36  ;;  %v1043_v13 = vsub.f32 %v1015_v54, %v1029_v56  ;;  %v2826_v36 = vld [vmem:[%s3104_s3 + $0x10] sm:$0xff] }
 0x205   :  { %1531 = vrsqrt.f32 %v1076_v31  ;;  %v1056_v45 = vmax.f32 %v1042_v24, 0.0  ;;  %v873_v16 = vpop.xlane.xlu1 %872  ;;  %v1125_v41 = vmul.f32 %v2798_v6, %v2742_v15  ;;  %v2811_v46 = vmul.f32 0.0051020407, %v869_v0 }
 0x206   :  { %1146 = vrot.lane.b32.xlu1 %v1117_v62, %s1552_s18  ;;  %v1116_v18 = vmul.f32 %v2795_v7, %v2744_v11  ;;  %1533 = vrsqrt.f32 %v1077_v9  ;;  %v1057_v47 = vmax.f32 %v1043_v13, 0.0  ;;  %v2817_v56 = vmul.f32 0.0051020407, %v873_v16 }
 0x207   :  { %v1084_v40 = vadd.f32 1e-05, %v1056_v45  ;;  %v1530_v34 = vpop.eup %1529  ;;  %v1022_v15 = vmul.f32 %v2811_v46, %v2811_v46 }
 0x208   :  { %1144 = vrot.lane.b32.xlu0 %v1116_v18, %s1552_s18  ;;  %v901_v35 = vpop.xlane.xlu0 %900  ;;  %v1085_v42 = vadd.f32 1e-05, %v1057_v47  ;;  %v2815_v49 = vmul.f32 %v1530_v34, %v2806_v52  ;;  %v1023_v62 = vmul.f32 %v2817_v56, %v2817_v56  ;;  %v2844_v34 = vld [vmem:[%s3104_s3 + $0x50] sm:$0xff] }
 0x209   :  { %1535 = vrsqrt.f32 %v1084_v40  ;;  %v905_v11 = vpop.xlane.xlu1 %904 }
 0x20a   :  { %1162 = vrot.lane.b32.xlu1 %v1125_v41, %s1552_s18  ;;  %1537 = vrsqrt.f32 %v1085_v42  ;;  %v1124_v53 = vmul.f32 %v2815_v49, %v2754_v17  ;;  %v2834_v17 = vld [vmem:[%s3104_s3 + $0x18] sm:$0xff] }
 0x20c   :  { %v953_v8 = vpop.xlane.xlu0 %952  ;;  %1160 = vrot.lane.b32.xlu0 %v1124_v53, %s1552_s18 }
 0x20d   :  { %v1008_v31 = vmul.f32 0.0051020407, %v953_v8  ;;  %v957_v24 = vpop.xlane.xlu1 %956 }
 0x20e   :  { %v1009_v9 = vmul.f32 0.0051020407, %v957_v24 }
 0x20f   :  { %v1532_v54 = vpop.eup %1531  ;;  %v1036_v0 = vsub.f32 %v1008_v31, %v1022_v15 }
 0x210   :  { %v877_v45 = vpop.xlane.xlu0 %876  ;;  %v2837_v13 = vmul.f32 %v1532_v54, %v2826_v36  ;;  %v1534_v16 = vpop.eup %1533  ;;  %v1037_v40 = vsub.f32 %v1009_v9, %v1023_v62  ;;  %v2856_v54 = vld [vmem:[%s3104_s3 + $0x58] sm:$0xff]  ;;  %v2858_v62 = vmul.f32 0.0051020407, %v901_v35 }
 0x211   :  { %v1050_v18 = vmax.f32 %v1036_v0, 0.0  ;;  %v2839_v47 = vmul.f32 0.0051020407, %v877_v45  ;;  %v881_v41 = vpop.xlane.xlu1 %880  ;;  %v2849_v53 = vmul.f32 %v1534_v16, %v2834_v17 }
 0x212   :  { %v1118_v42 = vmul.f32 %v2837_v13, %v2758_v23  ;;  %v1051_v31 = vmax.f32 %v1037_v40, 0.0  ;;  %v2851_v24 = vmul.f32 0.0051020407, %v881_v41  ;;  %v1003_v40 = vmul.f32 0.0051020407, %v905_v11 }
 0x213   :  { %v1536_v8 = vpop.eup %1535  ;;  %v1078_v15 = vadd.f32 1e-05, %v1050_v18  ;;  %v1024_v16 = vmul.f32 %v2839_v47, %v2839_v47  ;;  %v1119_v35 = vmul.f32 %v2849_v53, %v2760_v1 }
 0x214   :  { %v961_v0 = vpop.xlane.xlu0 %960  ;;  %1148 = vrot.lane.b32.xlu1 %v1118_v42, %s1552_s18  ;;  %v2862_v23 = vmul.f32 %v1536_v8, %v2844_v34  ;;  %v1538_v9 = vpop.eup %1537  ;;  %v1079_v45 = vadd.f32 1e-05, %v1051_v31  ;;  %v1025_v8 = vmul.f32 %v2851_v24, %v2851_v24  ;;  %v1031_v30 = vmul.f32 %v1003_v40, %v1003_v40 }
 0x215   :  { %1539 = vrsqrt.f32 %v1078_v15  ;;  %v1010_v18 = vmul.f32 0.0051020407, %v961_v0  ;;  %v965_v41 = vpop.xlane.xlu1 %964  ;;  %v2871_v42 = vmul.f32 %v1538_v9, %v2856_v54 }
 0x216   :  { %v1126_v12 = vmul.f32 %v2862_v23, %v2764_v10  ;;  %1541 = vrsqrt.f32 %v1079_v45  ;;  %v1011_v31 = vmul.f32 0.0051020407, %v965_v41  ;;  %v1030_v10 = vmul.f32 %v2858_v62, %v2858_v62 }
 0x217   :  { %v1038_v15 = vsub.f32 %v1010_v18, %v1024_v16  ;;  %v1127_v45 = vmul.f32 %v2871_v42, %v2766_v50 }
 0x218   :  { %1164 = vrot.lane.b32.xlu0 %v1126_v12, %s1552_s18  ;;  %v985_v0 = vpop.xlane.xlu0 %984  ;;  %1150 = vrot.lane.b32.xlu1 %v1119_v35, %s1552_s18  ;;  %v1039_v39 = vsub.f32 %v1011_v31, %v1025_v8  ;;  %v2885_v35 = vld [vmem:[%s3104_s3 + $0x20] sm:$0xff] }
 0x219   :  { %v1052_v11 = vmax.f32 %v1038_v15, 0.0  ;;  %v1016_v1 = vmul.f32 0.0051020407, %v985_v0  ;;  %v989_v9 = vpop.xlane.xlu1 %988 }
 0x21a   :  { %v1053_v5 = vmax.f32 %v1039_v39, 0.0  ;;  %v1017_v18 = vmul.f32 0.0051020407, %v989_v9  ;;  %v2890_v39 = vld [vmem:[%s3104_s3 + $0x28] sm:$0xff] }
 0x21b   :  { %v1080_v28 = vadd.f32 1e-05, %v1052_v11  ;;  %v1044_v16 = vsub.f32 %v1016_v1, %v1030_v10  ;;  %v2900_v1 = vld [vmem:[%s3104_s3 + $0x30] sm:$0xff] }
 0x21c   :  { %1166 = vrot.lane.b32.xlu1 %v1127_v45, %s1552_s18  ;;  %v1045_v41 = vsub.f32 %v1017_v18, %v1031_v30  ;;  %v1081_v8 = vadd.f32 1e-05, %v1053_v5 }
 0x21d   :  { %1543 = vrsqrt.f32 %v1080_v28  ;;  %v1058_v12 = vmax.f32 %v1044_v16, 0.0 }
 0x21e   :  { %v1059_v0 = vmax.f32 %v1045_v41, 0.0 }
 0x21f   :  { %v1540_v15 = vpop.eup %1539  ;;  %v1086_v31 = vadd.f32 1e-05, %v1058_v12 }
 0x220   :  { %v1106_v50 = vmul.f32 %v1540_v15, %v2885_v35  ;;  %v1542_v10 = vpop.eup %1541  ;;  %v1087_v28 = vadd.f32 1e-05, %v1059_v0  ;;  %v2920_v15 = vld [vmem:[%s3104_s3 + $0x38] sm:$0xff] }
 0x221   :  { %1545 = vrsqrt.f32 %v1086_v31  ;;  %v1107_v11 = vmul.f32 %v1542_v10, %v2890_v39 }
 0x222   :  { %1547 = vrsqrt.f32 %v1081_v8  ;;  %v1120_v30 = vmul.f32 %v1106_v50, %v2811_v46  ;;  %v2907_v46 = vld [vmem:[%s3104_s3 + $0x60] sm:$0xff] }
 0x223   :  { %1549 = vrsqrt.f32 %v1087_v28  ;;  %v1121_v5 = vmul.f32 %v1107_v11, %v2817_v56  ;;  %v2913_v56 = vld [vmem:[%s3104_s3 + $0x68] sm:$0xff] }
 0x224   :  { %1152 = vrot.lane.b32.xlu0 %v1120_v30, %s1552_s18 }
 0x225   :  { %1154 = vrot.lane.b32.xlu1 %v1121_v5, %s1552_s18 }
 0x227   :  { %v1544_v9 = vpop.eup %1543 }
 0x228   :  { %v1108_v45 = vmul.f32 %v1544_v9, %v2900_v1 }
 0x22a   :  { %v1122_v16 = vmul.f32 %v1108_v45, %v2839_v47 }
 0x22b   :  { %v1546_v18 = vpop.eup %1545 }
 0x22c   :  { %v1548_v12 = vpop.eup %1547  ;;  %1156 = vrot.lane.b32.xlu0 %v1122_v16, %s1552_s18  ;;  %v1114_v41 = vmul.f32 %v1546_v18, %v2907_v46 }
 0x22d   :  { %v1550_v8 = vpop.eup %1549  ;;  %v1109_v10 = vmul.f32 %v1548_v12, %v2920_v15 }
 0x22e   :  { %v1128_v31 = vmul.f32 %v1114_v41, %v2858_v62  ;;  %v1115_v47 = vmul.f32 %v1550_v8, %v2913_v56 }
 0x22f   :  { %v1123_v28 = vmul.f32 %v1109_v10, %v2851_v24 }
 0x230   :  { %1168 = vrot.lane.b32.xlu0 %v1128_v31, %s1552_s18  ;;  %v1129_v0 = vmul.f32 %v1115_v47, %v1003_v40 }
 0x232   :  { %1170 = vrot.lane.b32.xlu1 %v1129_v0, %s1552_s18 }
 0x234   :  { %1202 = vperm.xlu0 %1515, %v2795_v7   ;;  %v1553_v7 = vmov 1  }
 0x236   :  { %1158 = vrot.lane.b32.xlu1 %v1123_v28, %s1552_s18 }
 0x238   :  { %1217 = vperm.xlu0 %1515, %v2849_v53  }
 0x23a   :  { %1207 = vperm.xlu1 %1516, %v2788_v33  }
 0x23c   :  { %1227 = vperm.xlu0 %1515, %v1107_v11  }
 0x23e   :  { %1212 = vperm.xlu1 %1516, %v2837_v13  }
 0x240   :  { %1237 = vperm.xlu0 %1515, %v1109_v10  }
 0x242   :  { %1222 = vperm.xlu1 %1516, %v1106_v50  }
 0x244   :  { %1247 = vperm.xlu0 %1515, %v2798_v6  }
 0x246   :  { %1232 = vperm.xlu1 %1516, %v1108_v45  }
 0x248   :  { %1257 = vperm.xlu0 %1515, %v2871_v42  }
 0x24a   :  { %1242 = vperm.xlu1 %1516, %v2815_v49  }
 0x24c   :  { %1267 = vperm.xlu0 %1515, %v1115_v47  }
 0x24e   :  { %1252 = vperm.xlu1 %1516, %v2862_v23  }
 0x250   :  { %1518 = vset.pattern.permute.xlu0 %v1553_v7 }
 0x252   :  { %1262 = vperm.xlu1 %1516, %v1114_v41  }
 0x256   :  { %1517 = vset.pattern.permute.xlu1 %v1553_v7 }
 0x278   :  { %v1147_v33 = vpop.permute.xlu1 %1146 }
 0x279   :  { %v1187_v49 = vsub.f32 %v2771_v29, %v1147_v33 }
 0x27a   :  { %v1145_v53 = vpop.permute.xlu0 %1144 }
 0x27b   :  { %v1186_v13 = vsub.f32 %v2780_v48, %v1145_v53 }
 0x27c   :  { %v1163_v24 = vpop.permute.xlu1 %1162 }
 0x27d   :  { %1300 = vperm.xlu1 %1517, %v1186_v13   ;;  %v1195_v6 = vsub.f32 %v2785_v51, %v1163_v24 }
 0x27e   :  { %v1161_v62 = vpop.permute.xlu0 %1160 }
 0x27f   :  { %v1194_v40 = vsub.f32 %v2806_v52, %v1161_v62 }
 0x281   :  { %1345 = vperm.xlu1 %1517, %v1195_v6   ;;  %1340 = vperm.xlu0 %1518, %v1194_v40  }
 0x285   :  { %1305 = vperm.xlu0 %1518, %v1187_v49  }
 0x286   :  { %v1149_v23 = vpop.permute.xlu1 %1148 }
 0x287   :  { %v1188_v42 = vsub.f32 %v2826_v36, %v1149_v23 }
 0x289   :  { %1310 = vperm.xlu1 %1517, %v1188_v42  }
 0x28a   :  { %v1165_v50 = vpop.permute.xlu0 %1164  ;;  %v1151_v30 = vpop.permute.xlu1 %1150 }
 0x28b   :  { %v1196_v48 = vsub.f32 %v2844_v34, %v1165_v50  ;;  %v1189_v11 = vsub.f32 %v2834_v17, %v1151_v30 }
 0x28d   :  { %1350 = vperm.xlu0 %1518, %v1196_v48   ;;  %1315 = vperm.xlu1 %1517, %v1189_v11  }
 0x28e   :  { %v1167_v51 = vpop.permute.xlu1 %1166 }
 0x28f   :  { %v1197_v52 = vsub.f32 %v2856_v54, %v1167_v51 }
 0x291   :  { %1355 = vperm.xlu1 %1517, %v1197_v52  }
 0x296   :  { %v1153_v5 = vpop.permute.xlu0 %1152 }
 0x297   :  { %v1190_v29 = vsub.f32 %v2885_v35, %v1153_v5  ;;  %v1155_v9 = vpop.permute.xlu1 %1154 }
 0x298   :  { %v1191_v45 = vsub.f32 %v2890_v39, %v1155_v9 }
 0x299   :  { %1320 = vperm.xlu0 %1518, %v1190_v29  }
 0x29a   :  { %1325 = vperm.xlu1 %1517, %v1191_v45  }
 0x29e   :  { %v1157_v36 = vpop.permute.xlu0 %1156 }
 0x29f   :  { %v1192_v16 = vsub.f32 %v2900_v1, %v1157_v36 }
 0x2a1   :  { %1330 = vperm.xlu0 %1518, %v1192_v16  }
 0x2a2   :  { %v1169_v34 = vpop.permute.xlu0 %1168 }
 0x2a3   :  { %v1198_v17 = vsub.f32 %v2907_v46, %v1169_v34 }
 0x2a4   :  { %v1171_v18 = vpop.permute.xlu1 %1170 }
 0x2a5   :  { %1360 = vperm.xlu0 %1518, %v1198_v17   ;;  %v1199_v35 = vsub.f32 %v2913_v56, %v1171_v18 }
 0x2a8   :  { %v1159_v12 = vpop.permute.xlu1 %1158 }
 0x2a9   :  { %v1193_v54 = vsub.f32 %v2920_v15, %v1159_v12 }
 0x2ab   :  { %1335 = vperm.xlu1 %1517, %v1193_v54  }
 0x2af   :  { %1365 = vperm.xlu1 %1517, %v1199_v35  }
 0x2b3   :  { %v1203_v39 = vpop.permute.xlu0 %1202 }
 0x2b4   :  { %v1270_v56 = vmul.f32 %v2557_v55, %v1203_v39  ;;  %v1271_v53 = vmul.f32 %v2561_v59, %v1203_v39 }
 0x2b7   :  { %v1218_v31 = vpop.permute.xlu0 %1217 }
 0x2b8   :  { %v1276_v9 = vmul.f32 %v2605_v37, %v1218_v31 }
 0x2b9   :  { %v1208_v41 = vpop.permute.xlu1 %1207 }
 0x2bb   :  { %v2953_v1 = vpop.permute.xlu0 %1227 }
 0x2bc   :  { %v1281_v39 = vmul.f32 %v2648_v43, %v2953_v1 }
 0x2bd   :  { %v1213_v8 = vpop.permute.xlu1 %1212 }
 0x2be   :  { %v1274_v11 = vmul.f32 %v2588_v14, %v1213_v8  ;;  %v1275_v51 = vmul.f32 %v2596_v22, %v1213_v8  ;;  %v1277_v14 = vmul.f32 %v2610_v21, %v1218_v31 }
 0x2bf   :  { %v2957_v46 = vpop.permute.xlu0 %1237 }
 0x2c1   :  { %v2951_v47 = vpop.permute.xlu1 %1222 }
 0x2c2   :  { %v1278_v12 = vmul.f32 %v2626_v58, %v2951_v47  ;;  %v1279_v54 = vmul.f32 %v2632_v4, %v2951_v47 }
 0x2c3   :  { %v1248_v28 = vpop.permute.xlu0 %1247 }
 0x2c4   :  { %v1288_v40 = vmul.f32 %v1248_v28, %v2567_v63  ;;  %v1289_v49 = vmul.f32 %v1248_v28, %v2572_v2  ;;  %v1272_v2 = vmul.f32 %v2565_v19, %v1208_v41 }
 0x2c5   :  { %v2955_v0 = vpop.permute.xlu1 %1232 }
 0x2c6   :  { %v1283_v43 = vmul.f32 %v2669_v27, %v2955_v0 }
 0x2c7   :  { %v1258_v15 = vpop.permute.xlu0 %1257 }
 0x2c8   :  { %v1292_v21 = vmul.f32 %v1258_v15, %v2607_v38 }
 0x2c9   :  { %v1243_v10 = vpop.permute.xlu1 %1242 }
 0x2ca   :  { %v1286_v59 = vmul.f32 %v1243_v10, %v2559_v57  ;;  %v1287_v23 = vmul.f32 %v1243_v10, %v2563_v60  ;;  %v1273_v57 = vmul.f32 %v2570_v3, %v1208_v41  ;;  %v1280_v41 = vmul.f32 %v2639_v32, %v2953_v1 }
 0x2cb   :  { %v2963_v62 = vpop.permute.xlu0 %1267  ;;  %v1282_v32 = vmul.f32 %v2665_v20, %v2955_v0 }
 0x2cd   :  { %v1253_v7 = vpop.permute.xlu1 %1252 }
 0x2ce   :  { %v1290_v22 = vmul.f32 %v1253_v7, %v2590_v26  ;;  %v1291_v45 = vmul.f32 %v1253_v7, %v2598_v25  ;;  %v1293_v26 = vmul.f32 %v1258_v15, %v2612_v44  ;;  %v3116_v15 = vld [vmem:[#allocation2_spill] sm:$0xff] }
 0x2d1   :  { %v2959_v33 = vpop.permute.xlu1 %1262 }
 0x2d2   :  { %v1294_v7 = vmul.f32 %v2959_v33, %v2629_v61  ;;  %v3117_v61 = vld [vmem:[#allocation5_spill] sm:$0xff] }
 0x2fc   :  { %v1301_v13 = vpop.permute.xlu1 %1300 }
 0x2fd   :  { %v1368_v24 = vadd.f32 %v1301_v13, %v1270_v56  ;;  %v1369_v6 = vadd.f32 %v1301_v13, %v1271_v53  ;;  %v1295_v56 = vmul.f32 %v2959_v33, %v3116_v15  ;;  %v1284_v33 = vmul.f32 %v3117_v61, %v2957_v46  ;;  %v3118_v53 = vld [vmem:[#allocation6_spill] sm:$0xff] }
 0x2fe   :  { %v1285_v13 = vmul.f32 %v3118_v53, %v2957_v46 }
 0x2ff   :  { %1396 = vst [vmem:[%s3105_s4] sm:$0xff] %v1368_v24  ;;  %1397 = vst.msk [vmem:[%s3105_s4 + $0x8] sm:$0xff] %vm849_vm1, %v1369_v6 }
 0x300   :  { %v1346_v55 = vpop.permute.xlu1 %1345  ;;  %v1341_v30 = vpop.permute.xlu0 %1340 }
 0x301   :  { %v1386_v42 = vadd.f32 %v1346_v55, %v1288_v40  ;;  %v1387_v50 = vadd.f32 %v1346_v55, %v1289_v49  ;;  %v1384_v63 = vadd.f32 %v1341_v30, %v1286_v59  ;;  %v1385_v48 = vadd.f32 %v1341_v30, %v1287_v23  ;;  %v3119_v49 = vld [vmem:[#allocation3_spill] sm:$0xff]  ;;  %v3120_v59 = vld [vmem:[#allocation4_spill] sm:$0xff] }
 0x302   :  { %v1296_v55 = vmul.f32 %v2963_v62, %v3119_v49  ;;  %v1297_v23 = vmul.f32 %v2963_v62, %v3120_v59 }
 0x303   :  { %1414 = vst [vmem:[%s3105_s4 + $0x90] sm:$0xff] %v1386_v42  ;;  %1415 = vst.msk [vmem:[%s3105_s4 + $0x98] sm:$0xff] %vm849_vm1, %v1387_v50 }
 0x304   :  { %1412 = vst [vmem:[%s3105_s4 + $0x80] sm:$0xff] %v1384_v63  ;;  %1413 = vst.msk [vmem:[%s3105_s4 + $0x88] sm:$0xff] %vm849_vm1, %v1385_v48  ;;  %v1306_v60 = vpop.permute.xlu0 %1305 }
 0x305   :  { %v1370_v52 = vadd.f32 %v1306_v60, %v1272_v2  ;;  %v1371_v5 = vadd.f32 %v1306_v60, %v1273_v57 }
 0x307   :  { %1398 = vst [vmem:[%s3105_s4 + $0x10] sm:$0xff] %v1370_v52  ;;  %1399 = vst.msk [vmem:[%s3105_s4 + $0x18] sm:$0xff] %vm849_vm1, %v1371_v5 }
 0x308   :  { %v1311_v29 = vpop.permute.xlu1 %1310 }
 0x309   :  { %v1372_v19 = vadd.f32 %v1311_v29, %v1274_v11  ;;  %v1373_v3 = vadd.f32 %v1311_v29, %v1275_v51 }
 0x30b   :  { %1400 = vst [vmem:[%s3105_s4 + $0x20] sm:$0xff] %v1372_v19  ;;  %1401 = vst.msk [vmem:[%s3105_s4 + $0x28] sm:$0xff] %vm849_vm1, %v1373_v3 }
 0x30c   :  { %v1351_v36 = vpop.permute.xlu0 %1350  ;;  %v1316_v16 = vpop.permute.xlu1 %1315 }
 0x30d   :  { %v1388_v34 = vadd.f32 %v1351_v36, %v1290_v22  ;;  %v1389_v17 = vadd.f32 %v1351_v36, %v1291_v45  ;;  %v1374_v37 = vadd.f32 %v1316_v16, %v1276_v9  ;;  %v1375_v18 = vadd.f32 %v1316_v16, %v1277_v14 }
 0x30f   :  { %1416 = vst [vmem:[%s3105_s4 + $0xa0] sm:$0xff] %v1388_v34  ;;  %1417 = vst.msk [vmem:[%s3105_s4 + $0xa8] sm:$0xff] %vm849_vm1, %v1389_v17 }
 0x310   :  { %1402 = vst [vmem:[%s3105_s4 + $0x30] sm:$0xff] %v1374_v37  ;;  %1403 = vst.msk [vmem:[%s3105_s4 + $0x38] sm:$0xff] %vm849_vm1, %v1375_v18  ;;  %v1356_v25 = vpop.permute.xlu1 %1355 }
 0x311   :  { %v1390_v38 = vadd.f32 %v1356_v25, %v1292_v21  ;;  %v1391_v44 = vadd.f32 %v1356_v25, %v1293_v26 }
 0x313   :  { %1418 = vst [vmem:[%s3105_s4 + $0xb0] sm:$0xff] %v1390_v38  ;;  %1419 = vst.msk [vmem:[%s3105_s4 + $0xb8] sm:$0xff] %vm849_vm1, %v1391_v44 }
 0x318   :  { %v1321_v35 = vpop.permute.xlu0 %1320 }
 0x319   :  { %v1376_v8 = vadd.f32 %v1321_v35, %v1278_v12  ;;  %v1377_v31 = vadd.f32 %v1321_v35, %v1279_v54  ;;  %v1326_v10 = vpop.permute.xlu1 %1325 }
 0x31a   :  { %v1378_v58 = vadd.f32 %v1326_v10, %v1280_v41  ;;  %v1379_v4 = vadd.f32 %v1326_v10, %v1281_v39 }
 0x31b   :  { %1404 = vst [vmem:[%s3105_s4 + $0x40] sm:$0xff] %v1376_v8  ;;  %1405 = vst.msk [vmem:[%s3105_s4 + $0x48] sm:$0xff] %vm849_vm1, %v1377_v31 }
 0x31c   :  { %1406 = vst [vmem:[%s3105_s4 + $0x50] sm:$0xff] %v1378_v58  ;;  %1407 = vst.msk [vmem:[%s3105_s4 + $0x58] sm:$0xff] %vm849_vm1, %v1379_v4 }
 0x320   :  { %v1331_v47 = vpop.permute.xlu0 %1330 }
 0x321   :  { %v1380_v1 = vadd.f32 %v1331_v47, %v1282_v32  ;;  %v1381_v28 = vadd.f32 %v1331_v47, %v1283_v43 }
 0x323   :  { %1408 = vst [vmem:[%s3105_s4 + $0x60] sm:$0xff] %v1380_v1  ;;  %1409 = vst.msk [vmem:[%s3105_s4 + $0x68] sm:$0xff] %vm849_vm1, %v1381_v28 }
 0x324   :  { %v1361_v20 = vpop.permute.xlu0 %1360 }
 0x325   :  { %v1392_v27 = vadd.f32 %v1361_v20, %v1294_v7  ;;  %v1393_v0 = vadd.f32 %v1361_v20, %v1295_v56 }
 0x327   :  { %1420 = vst [vmem:[%s3105_s4 + $0xc0] sm:$0xff] %v1392_v27  ;;  %1421 = vst.msk [vmem:[%s3105_s4 + $0xc8] sm:$0xff] %vm849_vm1, %v1393_v0 }
 0x32a   :  { %v1336_v24 = vpop.permute.xlu1 %1335 }
 0x32b   :  { %v1382_v6 = vadd.f32 %v1336_v24, %v1284_v33  ;;  %v1383_v40 = vadd.f32 %v1336_v24, %v1285_v13 }
 0x32d   :  { %1410 = vst [vmem:[%s3105_s4 + $0x70] sm:$0xff] %v1382_v6  ;;  %1411 = vst.msk [vmem:[%s3105_s4 + $0x78] sm:$0xff] %vm849_vm1, %v1383_v40 }
 0x32e   :  { %v1366_v42 = vpop.permute.xlu1 %1365 }
 0x32f   :  { %v1394_v46 = vadd.f32 %v1366_v42, %v1296_v55  ;;  %v1395_v50 = vadd.f32 %v1366_v42, %v1297_v23 }
 0x331   :  { %1422 = vst [vmem:[%s3105_s4 + $0xd0] sm:$0xff] %v1394_v46  ;;  %1423 = vst.msk [vmem:[%s3105_s4 + $0xd8] sm:$0xff] %vm849_vm1, %v1395_v50 }

</bundles_post_ra>
